<compile_context>
chip_gen: v6e
topology: v6e:2x2x1
jax: 0.10.0
libtpu: 0.0.40
codegen_flags: <defaults>
</compile_context>

<pallas_src>
import functools

import jax
import jax.numpy as jnp
from jax.experimental import pallas as pl
from jax.experimental.pallas import tpu as pltpu


NEG_INF = -1e30  # finite "minus infinity" (safe for f32 softmax masking)


def _tile(dim, target, align):
    """Largest tile <= target that divides `dim` and is a multiple of `align`,
    falling back to the full dim (a full-dim block is always legal)."""
    if dim <= target:
        return dim
    t = (target // align) * align
    while t >= align:
        if dim % t == 0:
            return t
        t -= align
    return dim


# ----------------------------- Pallas kernels ------------------------------ #

def _make_ln_matmul_kernel(has_bias, activation):
    """Fused LayerNorm -> (bf16) matmul -> (+bias) -> (GELU) kernel."""
    def kernel(*refs):
        if has_bias:
            x_ref, g_ref, b_ref, w_ref, bias_ref, o_ref = refs
        else:
            x_ref, g_ref, b_ref, w_ref, o_ref = refs
            bias_ref = None
        x = x_ref[...]                                        # (tm, D) f32
        mu = jnp.mean(x, axis=-1, keepdims=True)
        var = jnp.mean((x - mu) ** 2, axis=-1, keepdims=True)
        xn = (x - mu) * jax.lax.rsqrt(var + 1e-5) * g_ref[...] + b_ref[...]
        y = jnp.dot(xn.astype(jnp.bfloat16), w_ref[...],
                    preferred_element_type=jnp.float32)       # (tm, tn) f32
        if bias_ref is not None:
            y = y + bias_ref[...]
        if activation == "gelu":
            y = jax.nn.gelu(y, approximate=True)
        o_ref[...] = y.astype(o_ref.dtype)
    return kernel


def _ln_qkv_kernel(x_ref, g_ref, b_ref, wq_ref, bq_ref, wk_ref, bk_ref,
                   wv_ref, bv_ref, q_ref, k_ref, v_ref):
    """Fused LayerNorm -> three bf16 projections (Q, K, V)."""
    x = x_ref[...]
    mu = jnp.mean(x, axis=-1, keepdims=True)
    var = jnp.mean((x - mu) ** 2, axis=-1, keepdims=True)
    xn = (x - mu) * jax.lax.rsqrt(var + 1e-5) * g_ref[...] + b_ref[...]
    xb = xn.astype(jnp.bfloat16)
    q_ref[...] = (jnp.dot(xb, wq_ref[...], preferred_element_type=jnp.float32)
                  + bq_ref[...]).astype(q_ref.dtype)
    k_ref[...] = (jnp.dot(xb, wk_ref[...], preferred_element_type=jnp.float32)
                  + bk_ref[...]).astype(k_ref.dtype)
    v_ref[...] = (jnp.dot(xb, wv_ref[...], preferred_element_type=jnp.float32)
                  + bv_ref[...]).astype(v_ref.dtype)


def _matmul_bias_res_kernel(x_ref, w_ref, bias_ref, res_ref, o_ref, acc_ref):
    """Tiled matmul with K-accumulation; bias + residual fused in the epilogue."""
    @pl.when(pl.program_id(2) == 0)
    def _():
        acc_ref[...] = jnp.zeros_like(acc_ref)

    acc_ref[...] += jnp.dot(x_ref[...], w_ref[...],
                            preferred_element_type=jnp.float32)

    @pl.when(pl.program_id(2) == pl.num_programs(2) - 1)
    def _():
        o_ref[...] = (acc_ref[...] + bias_ref[...] + res_ref[...]).astype(o_ref.dtype)


def _flash_causal_kernel(q_ref, k_ref, v_ref, o_ref, m_ref, l_ref, acc_ref,
                         *, n_head, d_head, scale, tq, tk):
    """Flash-style causal multi-head attention (heads packed in the lane dim)."""
    qi = pl.program_id(1)
    ki = pl.program_id(2)
    q_start = qi * tq
    k_start = ki * tk

    @pl.when(ki == 0)
    def _():
        m_ref[...] = jnp.full(m_ref.shape, NEG_INF, jnp.float32)
        l_ref[...] = jnp.zeros_like(l_ref)
        acc_ref[...] = jnp.zeros_like(acc_ref)

    # Skip kv tiles that are entirely above the causal diagonal.
    @pl.when(k_start <= q_start + (tq - 1))
    def _():
        q = q_ref[0]                                          # (tq, D) bf16
        k = k_ref[0]                                          # (tk, D) bf16
        v = v_ref[0]                                          # (tk, D) bf16
        row = jax.lax.broadcasted_iota(jnp.int32, (tq, tk), 0) + q_start
        col = jax.lax.broadcasted_iota(jnp.int32, (tq, tk), 1) + k_start
        causal = col <= row
        for h in range(n_head):
            sl = slice(h * d_head, (h + 1) * d_head)
            s = jax.lax.dot_general(q[:, sl], k[:, sl],
                                    (((1,), (1,)), ((), ())),
                                    preferred_element_type=jnp.float32) * scale
            s = jnp.where(causal, s, NEG_INF)
            m_prev = m_ref[:, h:h + 1]
            m_new = jnp.maximum(m_prev, jnp.max(s, axis=-1, keepdims=True))
            alpha = jnp.exp(m_prev - m_new)
            p = jnp.exp(s - m_new)
            l_ref[:, h:h + 1] = alpha * l_ref[:, h:h + 1] + jnp.sum(
                p, axis=-1, keepdims=True)
            pv = jnp.dot(p.astype(v.dtype), v[:, sl],
                         preferred_element_type=jnp.float32)
            acc_ref[:, sl] = alpha * acc_ref[:, sl] + pv
            m_ref[:, h:h + 1] = m_new

    @pl.when(ki == pl.num_programs(2) - 1)
    def _():
        outs = []
        for h in range(n_head):
            sl = slice(h * d_head, (h + 1) * d_head)
            inv = pl.reciprocal(l_ref[:, h:h + 1], approx=True)
            outs.append(acc_ref[:, sl] * inv)
        o_ref[0] = jnp.concatenate(outs, axis=-1).astype(o_ref.dtype)


# ------------------------------ kernel wrappers ----------------------------- #

def ln_linear(x, g, b, w, bias=None, activation=None, out_dtype=jnp.bfloat16,
              tm_target=256, tn_target=512):
    """y = act(LayerNorm(x) @ w + bias); grid over (M, N), full-K blocks."""
    M, D = x.shape
    N = w.shape[1]
    tm = _tile(M, tm_target, 16)
    tn = _tile(N, tn_target, 128)
    grid = (M // tm, N // tn)
    in_specs = [pl.BlockSpec((tm, D), lambda i, j: (i, 0)),
                pl.BlockSpec((1, D), lambda i, j: (0, 0)),
                pl.BlockSpec((1, D), lambda i, j: (0, 0)),
                pl.BlockSpec((D, tn), lambda i, j: (0, j))]
    args = [x, g, b, w]
    if bias is not None:
        in_specs.append(pl.BlockSpec((1, tn), lambda i, j: (0, j)))
        args.append(bias)
    return pl.pallas_call(
        _make_ln_matmul_kernel(bias is not None, activation),
        out_shape=jax.ShapeDtypeStruct((M, N), out_dtype),
        grid=grid,
        in_specs=in_specs,
        out_specs=pl.BlockSpec((tm, tn), lambda i, j: (i, j)),
        compiler_params=pltpu.CompilerParams(
            dimension_semantics=("parallel", "parallel")),
    )(*args)


def ln_qkv(x, g, b, wq, bq, wk, bk, wv, bv, tm_target=256, tn_target=512):
    """(q, k, v) = LayerNorm(x) @ (wq, wk, wv) + biases, all bf16, lane-dense."""
    M, D = x.shape
    tm = _tile(M, tm_target, 16)
    tn = _tile(D, tn_target, 128)
    grid = (M // tm, D // tn)
    x_spec = pl.BlockSpec((tm, D), lambda i, j: (i, 0))
    ln_spec = pl.BlockSpec((1, D), lambda i, j: (0, 0))
    w_spec = pl.BlockSpec((D, tn), lambda i, j: (0, j))
    b_spec = pl.BlockSpec((1, tn), lambda i, j: (0, j))
    o_spec = pl.BlockSpec((tm, tn), lambda i, j: (i, j))
    out_sds = jax.ShapeDtypeStruct((M, D), jnp.bfloat16)
    return pl.pallas_call(
        _ln_qkv_kernel,
        out_shape=(out_sds, out_sds, out_sds),
        grid=grid,
        in_specs=[x_spec, ln_spec, ln_spec,
                  w_spec, b_spec, w_spec, b_spec, w_spec, b_spec],
        out_specs=(o_spec, o_spec, o_spec),
        compiler_params=pltpu.CompilerParams(
            dimension_semantics=("parallel", "parallel")),
    )(x, g, b, wq, bq, wk, bk, wv, bv)


def linear_bias_residual(x, w, bias, res, out_dtype=jnp.float32,
                         tm_target=256, tn_target=512, tk_target=512):
    """out = x @ w + bias + res; tiled over (M, N, K) with an f32 accumulator."""
    M, K = x.shape
    N = w.shape[1]
    tm = _tile(M, tm_target, 16)
    tn = _tile(N, tn_target, 128)
    tk = _tile(K, tk_target, 128)
    grid = (M // tm, N // tn, K // tk)
    return pl.pallas_call(
        _matmul_bias_res_kernel,
        out_shape=jax.ShapeDtypeStruct((M, N), out_dtype),
        grid=grid,
        in_specs=[pl.BlockSpec((tm, tk), lambda i, j, k: (i, k)),
                  pl.BlockSpec((tk, tn), lambda i, j, k: (k, j)),
                  pl.BlockSpec((1, tn), lambda i, j, k: (0, j)),
                  pl.BlockSpec((tm, tn), lambda i, j, k: (i, j))],
        out_specs=pl.BlockSpec((tm, tn), lambda i, j, k: (i, j)),
        scratch_shapes=[pltpu.VMEM((tm, tn), jnp.float32)],
        compiler_params=pltpu.CompilerParams(
            dimension_semantics=("parallel", "parallel", "arbitrary")),
    )(x, w, bias, res)


def flash_causal_attention(q, k, v, *, n_head, tq_target=256):
    """q, k, v: (B, T, D=n_head*d_head) bf16 -> (B, T, D) bf16 (heads in lanes)."""
    B, T, D = q.shape
    d_head = D // n_head
    tq = _tile(T, tq_target, 16)
    tk = tq
    grid = (B, T // tq, T // tk)
    scale = 1.0 / (d_head ** 0.5)
    kernel = functools.partial(_flash_causal_kernel, n_head=n_head,
                               d_head=d_head, scale=scale, tq=tq, tk=tk)
    return pl.pallas_call(
        kernel,
        out_shape=jax.ShapeDtypeStruct((B, T, D), jnp.bfloat16),
        grid=grid,
        in_specs=[pl.BlockSpec((1, tq, D), lambda b, qi, ki: (b, qi, 0)),
                  pl.BlockSpec((1, tk, D), lambda b, qi, ki: (b, ki, 0)),
                  pl.BlockSpec((1, tk, D), lambda b, qi, ki: (b, ki, 0))],
        out_specs=pl.BlockSpec((1, tq, D), lambda b, qi, ki: (b, qi, 0)),
        scratch_shapes=[pltpu.VMEM((tq, n_head), jnp.float32),
                        pltpu.VMEM((tq, n_head), jnp.float32),
                        pltpu.VMEM((tq, D), jnp.float32)],
        compiler_params=pltpu.CompilerParams(
            dimension_semantics=("parallel", "parallel", "arbitrary")),
    )(q, k, v)


# ------------------------------ model definition ---------------------------- #

def init_params(key, vocab_size, max_len, n_layers, d_model, n_head):
    std = 0.02
    d_ff = 4 * d_model
    keys = list(jax.random.split(key, 3 + 6 * n_layers))
    ki = iter(keys)

    def w(shape):  # MXU weights stored in bf16
        return (std * jax.random.normal(next(ki), shape, jnp.float32)).astype(jnp.bfloat16)

    params = {
        "tok_emb": std * jax.random.normal(next(ki), (vocab_size, d_model), jnp.float32),
        "pos_emb": std * jax.random.normal(next(ki), (max_len, d_model), jnp.float32),
        "layers": [],
        "lnf_g": jnp.ones((1, d_model), jnp.float32),
        "lnf_b": jnp.zeros((1, d_model), jnp.float32),
    }
    for _ in range(n_layers):
        params["layers"].append({
            "ln1_g": jnp.ones((1, d_model), jnp.float32),
            "ln1_b": jnp.zeros((1, d_model), jnp.float32),
            "w_q": w((d_model, d_model)), "b_q": jnp.zeros((1, d_model), jnp.float32),
            "w_k": w((d_model, d_model)), "b_k": jnp.zeros((1, d_model), jnp.float32),
            "w_v": w((d_model, d_model)), "b_v": jnp.zeros((1, d_model), jnp.float32),
            "w_o": w((d_model, d_model)), "b_o": jnp.zeros((1, d_model), jnp.float32),
            "ln2_g": jnp.ones((1, d_model), jnp.float32),
            "ln2_b": jnp.zeros((1, d_model), jnp.float32),
            "w1": w((d_model, d_ff)), "b1": jnp.zeros((1, d_ff), jnp.float32),
            "w2": w((d_ff, d_model)), "b2": jnp.zeros((1, d_model), jnp.float32),
        })
    params["lm_head_w"] = w((d_model, vocab_size))
    return params


def autoregressive_lm_forward(params, tokens, *, n_head):
    B, T = tokens.shape
    D = params["tok_emb"].shape[1]
    vocab = params["lm_head_w"].shape[1]

    # embedding lookup + positional embedding (XLA glue; gather has no clean
    # dense-Pallas win at these sizes). Residual stream stays f32.
    h = (jnp.take(params["tok_emb"], tokens, axis=0)
         + params["pos_emb"][:T][None]).reshape(B * T, D)
    # TODO(synk): dropout (p) is a no-op at inference; not implemented as a kernel.

    for layer in params["layers"]:
        # --- causal self-attention block (pre-LN, all fused) ---
        q, k, v = ln_qkv(h, layer["ln1_g"], layer["ln1_b"],
                         layer["w_q"], layer["b_q"],
                         layer["w_k"], layer["b_k"],
                         layer["w_v"], layer["b_v"])
        attn = flash_causal_attention(q.reshape(B, T, D), k.reshape(B, T, D),
                                      v.reshape(B, T, D), n_head=n_head)
        h = linear_bias_residual(attn.reshape(B * T, D),
                                 layer["w_o"], layer["b_o"], h)

        # --- MLP block (pre-LN; LN+W1+GELU fused, W2+bias+residual fused) ---
        hid = ln_linear(h, layer["ln2_g"], layer["ln2_b"], layer["w1"],
                        bias=layer["b1"], activation="gelu",
                        out_dtype=jnp.bfloat16)
        h = linear_bias_residual(hid, layer["w2"], layer["b2"], h)

    # final LN fused into the lm_head matmul (no bias, f32 logits).
    logits = ln_linear(h, params["lnf_g"], params["lnf_b"], params["lm_head_w"],
                       bias=None, activation=None, out_dtype=jnp.float32)
    return logits.reshape(B, T, vocab)


# ----------------------------------- main ----------------------------------- #

if __name__ == "__main__":
    vocab_size = 64
    max_len = 16
    n_layers = 2
    d_model = 32
    n_head = 4
    B, T = 2, 8

    key = jax.random.PRNGKey(0)
    pkey, tkey = jax.random.split(key)
    params = init_params(pkey, vocab_size, max_len, n_layers, d_model, n_head)
    tokens = jax.random.randint(tkey, (B, T), 0, vocab_size, dtype=jnp.int32)

    fwd = jax.jit(functools.partial(autoregressive_lm_forward, n_head=n_head))
    logits = fwd(params, tokens)
    jax.block_until_ready(logits)

    assert logits.shape == (B, T, vocab_size)
    assert logits.dtype == jnp.float32
    assert bool(jnp.all(jnp.isfinite(logits)))
    print("KERNEL_OK")
</pallas_src>

<mosaic_0001>
module attributes {stable_mosaic.version = 11 : i64} {
  func.func @_matmul_bias_res_kernel(%arg0: i32, %arg1: i32, %arg2: i32, %arg3: memref<16x32xbf16, #tpu.memory_space<vmem>>, %arg4: memref<32x32xbf16, #tpu.memory_space<vmem>>, %arg5: memref<1x32xf32, #tpu.memory_space<vmem>>, %arg6: memref<16x32xf32, #tpu.memory_space<vmem>>, %arg7: memref<16x32xf32, #tpu.memory_space<vmem>>, %arg8: memref<16x32xf32, #tpu.memory_space<vmem>>) attributes {dimension_semantics = [#tpu.dimension_semantics<parallel>, #tpu.dimension_semantics<parallel>, #tpu.dimension_semantics<arbitrary>], iteration_bounds = array<i64: 1, 1, 1>, scalar_prefetch = 0 : i64, scratch_operands = 1 : i64, tpu.core_type = #tpu.core_type<tc>, window_params = [{transform_indices = @transform_0, window_bounds = array<i64: 16, 32>}, {transform_indices = @transform_1, window_bounds = array<i64: 32, 32>}, {transform_indices = @transform_2, window_bounds = array<i64: 1, 32>}, {transform_indices = @transform_3, window_bounds = array<i64: 16, 32>}, {transform_indices = @transform_4, window_bounds = array<i64: 16, 32>}]} {
    %c0_i32 = arith.constant 0 : i32
    %0 = arith.cmpi eq, %arg2, %c0_i32 : i32
    %1 = arith.extui %0 : i1 to i32
    %c0_i32_0 = arith.constant 0 : i32
    %2 = arith.cmpi ne, %1, %c0_i32_0 : i32
    scf.if %2 {
      %cst_10 = arith.constant 0.000000e+00 : f32
      %12 = vector.broadcast %cst_10 : f32 to vector<16x32xf32>
      %c0_11 = arith.constant 0 : index
      %c0_12 = arith.constant 0 : index
      %13 = vector.load %arg8[%c0_11, %c0_12] : memref<16x32xf32, #tpu.memory_space<vmem>>, vector<16x32xf32>
      tpu.vector_store %arg8[%c0_11, %c0_12], %12 {strides = array<i32>} : memref<16x32xf32, #tpu.memory_space<vmem>>, vector<16x32xf32>,
    } else {
    }
    %c0 = arith.constant 0 : index
    %c0_1 = arith.constant 0 : index
    %3 = vector.load %arg8[%c0, %c0_1] : memref<16x32xf32, #tpu.memory_space<vmem>>, vector<16x32xf32>
    %c0_2 = arith.constant 0 : index
    %c0_3 = arith.constant 0 : index
    %4 = vector.load %arg3[%c0_2, %c0_3] : memref<16x32xbf16, #tpu.memory_space<vmem>>, vector<16x32xbf16>
    %c0_4 = arith.constant 0 : index
    %c0_5 = arith.constant 0 : index
    %5 = vector.load %arg4[%c0_4, %c0_5] : memref<32x32xbf16, #tpu.memory_space<vmem>>, vector<32x32xbf16>
    %cst = arith.constant dense<0.000000e+00> : vector<16x32xf32>
    %6 = tpu.matmul %4, %5, %cst {dimension_numbers = #tpu.dot_dimension_numbers<[1], [0], [0], [1], [0, 0, 1, 1], [], []>} : vector<16x32xbf16>, vector<32x32xbf16>, vector<16x32xf32> -> vector<16x32xf32>
    %7 = arith.addf %3, %6 : vector<16x32xf32>
    %c0_6 = arith.constant 0 : index
    %c0_7 = arith.constant 0 : index
    %8 = vector.load %arg8[%c0_6, %c0_7] : memref<16x32xf32, #tpu.memory_space<vmem>>, vector<16x32xf32>
    tpu.vector_store %arg8[%c0_6, %c0_7], %7 {strides = array<i32>} : memref<16x32xf32, #tpu.memory_space<vmem>>, vector<16x32xf32>,
    %c0_i32_8 = arith.constant 0 : i32
    %9 = arith.cmpi eq, %arg2, %c0_i32_8 : i32
    %10 = arith.extui %9 : i1 to i32
    %c0_i32_9 = arith.constant 0 : i32
    %11 = arith.cmpi ne, %10, %c0_i32_9 : i32
    scf.if %11 {
      %c0_10 = arith.constant 0 : index
      %c0_11 = arith.constant 0 : index
      %12 = vector.load %arg8[%c0_10, %c0_11] : memref<16x32xf32, #tpu.memory_space<vmem>>, vector<16x32xf32>
      %c0_12 = arith.constant 0 : index
      %c0_13 = arith.constant 0 : index
      %13 = vector.load %arg5[%c0_12, %c0_13] : memref<1x32xf32, #tpu.memory_space<vmem>>, vector<1x32xf32>
      %14 = vector.broadcast %13 : vector<1x32xf32> to vector<16x32xf32>
      %15 = arith.addf %12, %14 : vector<16x32xf32>
      %c0_14 = arith.constant 0 : index
      %c0_15 = arith.constant 0 : index
      %16 = vector.load %arg6[%c0_14, %c0_15] : memref<16x32xf32, #tpu.memory_space<vmem>>, vector<16x32xf32>
      %17 = arith.addf %15, %16 : vector<16x32xf32>
      %c0_16 = arith.constant 0 : index
      %c0_17 = arith.constant 0 : index
      %18 = vector.load %arg7[%c0_16, %c0_17] : memref<16x32xf32, #tpu.memory_space<vmem>>, vector<16x32xf32>
      tpu.vector_store %arg7[%c0_16, %c0_17], %17 {strides = array<i32>} : memref<16x32xf32, #tpu.memory_space<vmem>>, vector<16x32xf32>,
    } else {
    }
    return
  }
  func.func @transform_0(%arg0: i32, %arg1: i32, %arg2: i32) -> (i32, i32) {
    %c0_i32 = arith.constant 0 : i32
    return %arg0, %arg2 : i32, i32
  }
  func.func @transform_1(%arg0: i32, %arg1: i32, %arg2: i32) -> (i32, i32) {
    %c0_i32 = arith.constant 0 : i32
    return %arg2, %arg1 : i32, i32
  }
  func.func @transform_2(%arg0: i32, %arg1: i32, %arg2: i32) -> (i32, i32) {
    %c0_i32 = arith.constant 0 : i32
    %c0_i32_0 = arith.constant 0 : i32
    return %c0_i32, %arg1 : i32, i32
  }
  func.func @transform_3(%arg0: i32, %arg1: i32, %arg2: i32) -> (i32, i32) {
    %c0_i32 = arith.constant 0 : i32
    return %arg0, %arg1 : i32, i32
  }
  func.func @transform_4(%arg0: i32, %arg1: i32, %arg2: i32) -> (i32, i32) {
    %c0_i32 = arith.constant 0 : i32
    return %arg0, %arg1 : i32, i32
  }
}

module attributes {stable_mosaic.version = 11 : i64} {
  func.func @_ln_qkv_kernel(%arg0: i32, %arg1: i32, %arg2: memref<16x32xf32, #tpu.memory_space<vmem>>, %arg3: memref<1x32xf32, #tpu.memory_space<vmem>>, %arg4: memref<1x32xf32, #tpu.memory_space<vmem>>, %arg5: memref<32x32xbf16, #tpu.memory_space<vmem>>, %arg6: memref<1x32xf32, #tpu.memory_space<vmem>>, %arg7: memref<32x32xbf16, #tpu.memory_space<vmem>>, %arg8: memref<1x32xf32, #tpu.memory_space<vmem>>, %arg9: memref<32x32xbf16, #tpu.memory_space<vmem>>, %arg10: memref<1x32xf32, #tpu.memory_space<vmem>>, %arg11: memref<16x32xbf16, #tpu.memory_space<vmem>>, %arg12: memref<16x32xbf16, #tpu.memory_space<vmem>>, %arg13: memref<16x32xbf16, #tpu.memory_space<vmem>>) attributes {dimension_semantics = [#tpu.dimension_semantics<parallel>, #tpu.dimension_semantics<parallel>], iteration_bounds = array<i64: 1, 1>, scalar_prefetch = 0 : i64, scratch_operands = 0 : i64, tpu.core_type = #tpu.core_type<tc>, window_params = [{transform_indices = @transform_0, window_bounds = array<i64: 16, 32>}, {pipeline_mode = #tpu.pipeline_mode<synchronous>, transform_indices = @transform_1, window_bounds = array<i64: 1, 32>}, {pipeline_mode = #tpu.pipeline_mode<synchronous>, transform_indices = @transform_2, window_bounds = array<i64: 1, 32>}, {transform_indices = @transform_3, window_bounds = array<i64: 32, 32>}, {transform_indices = @transform_4, window_bounds = array<i64: 1, 32>}, {transform_indices = @transform_5, window_bounds = array<i64: 32, 32>}, {transform_indices = @transform_6, window_bounds = array<i64: 1, 32>}, {transform_indices = @transform_7, window_bounds = array<i64: 32, 32>}, {transform_indices = @transform_8, window_bounds = array<i64: 1, 32>}, {transform_indices = @transform_9, window_bounds = array<i64: 16, 32>}, {transform_indices = @transform_10, window_bounds = array<i64: 16, 32>}, {transform_indices = @transform_11, window_bounds = array<i64: 16, 32>}]} {
    %c0 = arith.constant 0 : index
    %c0_0 = arith.constant 0 : index
    %0 = vector.load %arg2[%c0, %c0_0] : memref<16x32xf32, #tpu.memory_space<vmem>>, vector<16x32xf32>
    %cst = arith.constant dense<0.000000e+00> : vector<16xf32>
    %1 = vector.multi_reduction <add>, %0, %cst [1] : vector<16x32xf32> to vector<16xf32>
    %2 = vector.shape_cast %1 : vector<16xf32> to vector<16x1xf32>
    %cst_1 = arith.constant 3.200000e+01 : f32
    %3 = vector.broadcast %cst_1 : f32 to vector<16x1xf32>
    %4 = arith.divf %2, %3 : vector<16x1xf32>
    %5 = vector.broadcast %4 : vector<16x1xf32> to vector<16x32xf32>
    %6 = arith.subf %0, %5 : vector<16x32xf32>
    %7 = arith.mulf %6, %6 : vector<16x32xf32>
    %cst_2 = arith.constant dense<0.000000e+00> : vector<16xf32>
    %8 = vector.multi_reduction <add>, %7, %cst_2 [1] : vector<16x32xf32> to vector<16xf32>
    %9 = vector.shape_cast %8 : vector<16xf32> to vector<16x1xf32>
    %cst_3 = arith.constant 3.200000e+01 : f32
    %10 = vector.broadcast %cst_3 : f32 to vector<16x1xf32>
    %11 = arith.divf %9, %10 : vector<16x1xf32>
    %12 = vector.broadcast %4 : vector<16x1xf32> to vector<16x32xf32>
    %13 = arith.subf %0, %12 : vector<16x32xf32>
    %cst_4 = arith.constant 9.99999974E-6 : f32
    %14 = vector.broadcast %cst_4 : f32 to vector<16x1xf32>
    %15 = arith.addf %11, %14 : vector<16x1xf32>
    %16 = math.rsqrt %15 : vector<16x1xf32>
    %17 = vector.broadcast %16 : vector<16x1xf32> to vector<16x32xf32>
    %18 = arith.mulf %13, %17 : vector<16x32xf32>
    %c0_5 = arith.constant 0 : index
    %c0_6 = arith.constant 0 : index
    %19 = vector.load %arg3[%c0_5, %c0_6] : memref<1x32xf32, #tpu.memory_space<vmem>>, vector<1x32xf32>
    %20 = vector.broadcast %19 : vector<1x32xf32> to vector<16x32xf32>
    %21 = arith.mulf %18, %20 : vector<16x32xf32>
    %c0_7 = arith.constant 0 : index
    %c0_8 = arith.constant 0 : index
    %22 = vector.load %arg4[%c0_7, %c0_8] : memref<1x32xf32, #tpu.memory_space<vmem>>, vector<1x32xf32>
    %23 = vector.broadcast %22 : vector<1x32xf32> to vector<16x32xf32>
    %24 = arith.addf %21, %23 : vector<16x32xf32>
    %25 = arith.truncf %24 : vector<16x32xf32> to vector<16x32xbf16>
    %c0_9 = arith.constant 0 : index
    %c0_10 = arith.constant 0 : index
    %26 = vector.load %arg5[%c0_9, %c0_10] : memref<32x32xbf16, #tpu.memory_space<vmem>>, vector<32x32xbf16>
    %cst_11 = arith.constant dense<0.000000e+00> : vector<16x32xf32>
    %27 = tpu.matmul %25, %26, %cst_11 {dimension_numbers = #tpu.dot_dimension_numbers<[1], [0], [0], [1], [0, 0, 1, 1], [], []>} : vector<16x32xbf16>, vector<32x32xbf16>, vector<16x32xf32> -> vector<16x32xf32>
    %c0_12 = arith.constant 0 : index
    %c0_13 = arith.constant 0 : index
    %28 = vector.load %arg6[%c0_12, %c0_13] : memref<1x32xf32, #tpu.memory_space<vmem>>, vector<1x32xf32>
    %29 = vector.broadcast %28 : vector<1x32xf32> to vector<16x32xf32>
    %30 = arith.addf %27, %29 : vector<16x32xf32>
    %31 = arith.truncf %30 : vector<16x32xf32> to vector<16x32xbf16>
    %c0_14 = arith.constant 0 : index
    %c0_15 = arith.constant 0 : index
    %32 = vector.load %arg11[%c0_14, %c0_15] : memref<16x32xbf16, #tpu.memory_space<vmem>>, vector<16x32xbf16>
    tpu.vector_store %arg11[%c0_14, %c0_15], %31 {strides = array<i32>} : memref<16x32xbf16, #tpu.memory_space<vmem>>, vector<16x32xbf16>,
    %c0_16 = arith.constant 0 : index
    %c0_17 = arith.constant 0 : index
    %33 = vector.load %arg7[%c0_16, %c0_17] : memref<32x32xbf16, #tpu.memory_space<vmem>>, vector<32x32xbf16>
    %cst_18 = arith.constant dense<0.000000e+00> : vector<16x32xf32>
    %34 = tpu.matmul %25, %33, %cst_18 {dimension_numbers = #tpu.dot_dimension_numbers<[1], [0], [0], [1], [0, 0, 1, 1], [], []>} : vector<16x32xbf16>, vector<32x32xbf16>, vector<16x32xf32> -> vector<16x32xf32>
    %c0_19 = arith.constant 0 : index
    %c0_20 = arith.constant 0 : index
    %35 = vector.load %arg8[%c0_19, %c0_20] : memref<1x32xf32, #tpu.memory_space<vmem>>, vector<1x32xf32>
    %36 = vector.broadcast %35 : vector<1x32xf32> to vector<16x32xf32>
    %37 = arith.addf %34, %36 : vector<16x32xf32>
    %38 = arith.truncf %37 : vector<16x32xf32> to vector<16x32xbf16>
    %c0_21 = arith.constant 0 : index
    %c0_22 = arith.constant 0 : index
    %39 = vector.load %arg12[%c0_21, %c0_22] : memref<16x32xbf16, #tpu.memory_space<vmem>>, vector<16x32xbf16>
    tpu.vector_store %arg12[%c0_21, %c0_22], %38 {strides = array<i32>} : memref<16x32xbf16, #tpu.memory_space<vmem>>, vector<16x32xbf16>,
    %c0_23 = arith.constant 0 : index
    %c0_24 = arith.constant 0 : index
    %40 = vector.load %arg9[%c0_23, %c0_24] : memref<32x32xbf16, #tpu.memory_space<vmem>>, vector<32x32xbf16>
    %cst_25 = arith.constant dense<0.000000e+00> : vector<16x32xf32>
    %41 = tpu.matmul %25, %40, %cst_25 {dimension_numbers = #tpu.dot_dimension_numbers<[1], [0], [0], [1], [0, 0, 1, 1], [], []>} : vector<16x32xbf16>, vector<32x32xbf16>, vector<16x32xf32> -> vector<16x32xf32>
    %c0_26 = arith.constant 0 : index
    %c0_27 = arith.constant 0 : index
    %42 = vector.load %arg10[%c0_26, %c0_27] : memref<1x32xf32, #tpu.memory_space<vmem>>, vector<1x32xf32>
    %43 = vector.broadcast %42 : vector<1x32xf32> to vector<16x32xf32>
    %44 = arith.addf %41, %43 : vector<16x32xf32>
    %45 = arith.truncf %44 : vector<16x32xf32> to vector<16x32xbf16>
    %c0_28 = arith.constant 0 : index
    %c0_29 = arith.constant 0 : index
    %46 = vector.load %arg13[%c0_28, %c0_29] : memref<16x32xbf16, #tpu.memory_space<vmem>>, vector<16x32xbf16>
    tpu.vector_store %arg13[%c0_28, %c0_29], %45 {strides = array<i32>} : memref<16x32xbf16, #tpu.memory_space<vmem>>, vector<16x32xbf16>,
    return
  }
  func.func @transform_0(%arg0: i32, %arg1: i32) -> (i32, i32) {
    %c0_i32 = arith.constant 0 : i32
    %c0_i32_0 = arith.constant 0 : i32
    return %arg0, %c0_i32 : i32, i32
  }
  func.func @transform_1(%arg0: i32, %arg1: i32) -> (i32, i32) {
    %c0_i32 = arith.constant 0 : i32
    %c0_i32_0 = arith.constant 0 : i32
    %c0_i32_1 = arith.constant 0 : i32
    return %c0_i32, %c0_i32_0 : i32, i32
  }
  func.func @transform_2(%arg0: i32, %arg1: i32) -> (i32, i32) {
    %c0_i32 = arith.constant 0 : i32
    %c0_i32_0 = arith.constant 0 : i32
    %c0_i32_1 = arith.constant 0 : i32
    return %c0_i32, %c0_i32_0 : i32, i32
  }
  func.func @transform_3(%arg0: i32, %arg1: i32) -> (i32, i32) {
    %c0_i32 = arith.constant 0 : i32
    %c0_i32_0 = arith.constant 0 : i32
    return %c0_i32, %arg1 : i32, i32
  }
  func.func @transform_4(%arg0: i32, %arg1: i32) -> (i32, i32) {
    %c0_i32 = arith.constant 0 : i32
    %c0_i32_0 = arith.constant 0 : i32
    return %c0_i32, %arg1 : i32, i32
  }
  func.func @transform_5(%arg0: i32, %arg1: i32) -> (i32, i32) {
    %c0_i32 = arith.constant 0 : i32
    %c0_i32_0 = arith.constant 0 : i32
    return %c0_i32, %arg1 : i32, i32
  }
  func.func @transform_6(%arg0: i32, %arg1: i32) -> (i32, i32) {
    %c0_i32 = arith.constant 0 : i32
    %c0_i32_0 = arith.constant 0 : i32
    return %c0_i32, %arg1 : i32, i32
  }
  func.func @transform_7(%arg0: i32, %arg1: i32) -> (i32, i32) {
    %c0_i32 = arith.constant 0 : i32
    %c0_i32_0 = arith.constant 0 : i32
    return %c0_i32, %arg1 : i32, i32
  }
  func.func @transform_8(%arg0: i32, %arg1: i32) -> (i32, i32) {
    %c0_i32 = arith.constant 0 : i32
    %c0_i32_0 = arith.constant 0 : i32
    return %c0_i32, %arg1 : i32, i32
  }
  func.func @transform_9(%arg0: i32, %arg1: i32) -> (i32, i32) {
    %c0_i32 = arith.constant 0 : i32
    return %arg0, %arg1 : i32, i32
  }
  func.func @transform_10(%arg0: i32, %arg1: i32) -> (i32, i32) {
    %c0_i32 = arith.constant 0 : i32
    return %arg0, %arg1 : i32, i32
  }
  func.func @transform_11(%arg0: i32, %arg1: i32) -> (i32, i32) {
    %c0_i32 = arith.constant 0 : i32
    return %arg0, %arg1 : i32, i32
  }
}

module attributes {stable_mosaic.version = 11 : i64} {
  func.func @_flash_causal_kernel(%arg0: i32, %arg1: i32, %arg2: i32, %arg3: memref<1x8x32xbf16, #tpu.memory_space<vmem>>, %arg4: memref<1x8x32xbf16, #tpu.memory_space<vmem>>, %arg5: memref<1x8x32xbf16, #tpu.memory_space<vmem>>, %arg6: memref<1x8x32xbf16, #tpu.memory_space<vmem>>, %arg7: memref<8x4xf32, #tpu.memory_space<vmem>>, %arg8: memref<8x4xf32, #tpu.memory_space<vmem>>, %arg9: memref<8x32xf32, #tpu.memory_space<vmem>>) attributes {dimension_semantics = [#tpu.dimension_semantics<parallel>, #tpu.dimension_semantics<parallel>, #tpu.dimension_semantics<arbitrary>], iteration_bounds = array<i64: 2, 1, 1>, scalar_prefetch = 0 : i64, scratch_operands = 3 : i64, tpu.core_type = #tpu.core_type<tc>, window_params = [{transform_indices = @transform_0, window_bounds = array<i64: 1, 8, 32>}, {transform_indices = @transform_1, window_bounds = array<i64: 1, 8, 32>}, {transform_indices = @transform_2, window_bounds = array<i64: 1, 8, 32>}, {transform_indices = @transform_3, window_bounds = array<i64: 1, 8, 32>}]} {
    %c8_i32 = arith.constant 8 : i32
    %0 = arith.muli %arg1, %c8_i32 : i32
    %c8_i32_0 = arith.constant 8 : i32
    %1 = arith.muli %arg2, %c8_i32_0 : i32
    %c0_i32 = arith.constant 0 : i32
    %2 = arith.cmpi eq, %arg2, %c0_i32 : i32
    %3 = arith.extui %2 : i1 to i32
    %c0_i32_1 = arith.constant 0 : i32
    %4 = arith.cmpi ne, %3, %c0_i32_1 : i32
    scf.if %4 {
      %cst = arith.constant -1.000000e+30 : f32
      %12 = vector.broadcast %cst : f32 to vector<8x4xf32>
      %c0 = arith.constant 0 : index
      %c0_5 = arith.constant 0 : index
      %13 = vector.load %arg7[%c0, %c0_5] : memref<8x4xf32, #tpu.memory_space<vmem>>, vector<8x4xf32>
      tpu.vector_store %arg7[%c0, %c0_5], %12 {strides = array<i32>} : memref<8x4xf32, #tpu.memory_space<vmem>>, vector<8x4xf32>,
      %cst_6 = arith.constant 0.000000e+00 : f32
      %14 = vector.broadcast %cst_6 : f32 to vector<8x4xf32>
      %c0_7 = arith.constant 0 : index
      %c0_8 = arith.constant 0 : index
      %15 = vector.load %arg8[%c0_7, %c0_8] : memref<8x4xf32, #tpu.memory_space<vmem>>, vector<8x4xf32>
      tpu.vector_store %arg8[%c0_7, %c0_8], %14 {strides = array<i32>} : memref<8x4xf32, #tpu.memory_space<vmem>>, vector<8x4xf32>,
      %cst_9 = arith.constant 0.000000e+00 : f32
      %16 = vector.broadcast %cst_9 : f32 to vector<8x32xf32>
      %c0_10 = arith.constant 0 : index
      %c0_11 = arith.constant 0 : index
      %17 = vector.load %arg9[%c0_10, %c0_11] : memref<8x32xf32, #tpu.memory_space<vmem>>, vector<8x32xf32>
      tpu.vector_store %arg9[%c0_10, %c0_11], %16 {strides = array<i32>} : memref<8x32xf32, #tpu.memory_space<vmem>>, vector<8x32xf32>,
    } else {
    }
    %c7_i32 = arith.constant 7 : i32
    %5 = arith.addi %0, %c7_i32 : i32
    %6 = arith.cmpi sle, %1, %5 : i32
    %7 = arith.extui %6 : i1 to i32
    %c0_i32_2 = arith.constant 0 : i32
    %8 = arith.cmpi ne, %7, %c0_i32_2 : i32
    scf.if %8 {
      %c0 = arith.constant 0 : index
      %c0_5 = arith.constant 0 : index
      %c0_6 = arith.constant 0 : index
      %12 = vector.load %arg3[%c0, %c0_5, %c0_6] : memref<1x8x32xbf16, #tpu.memory_space<vmem>>, vector<1x8x32xbf16>
      %13 = vector.shape_cast %12 : vector<1x8x32xbf16> to vector<8x32xbf16>
      %c0_7 = arith.constant 0 : index
      %c0_8 = arith.constant 0 : index
      %c0_9 = arith.constant 0 : index
      %14 = vector.load %arg4[%c0_7, %c0_8, %c0_9] : memref<1x8x32xbf16, #tpu.memory_space<vmem>>, vector<1x8x32xbf16>
      %15 = vector.shape_cast %14 : vector<1x8x32xbf16> to vector<8x32xbf16>
      %c0_10 = arith.constant 0 : index
      %c0_11 = arith.constant 0 : index
      %c0_12 = arith.constant 0 : index
      %16 = vector.load %arg5[%c0_10, %c0_11, %c0_12] : memref<1x8x32xbf16, #tpu.memory_space<vmem>>, vector<1x8x32xbf16>
      %17 = vector.shape_cast %16 : vector<1x8x32xbf16> to vector<8x32xbf16>
      %18 = tpu.iota {dimensions = array<i32: 0>} : vector<8x8xi32>
      %19 = vector.broadcast %0 : i32 to vector<8x8xi32>
      %20 = arith.addi %18, %19 : vector<8x8xi32>
      %21 = tpu.iota {dimensions = array<i32: 1>} : vector<8x8xi32>
      %22 = vector.broadcast %1 : i32 to vector<8x8xi32>
      %23 = arith.addi %21, %22 : vector<8x8xi32>
      %24 = arith.cmpi sle, %23, %20 : vector<8x8xi32>
      %25 = vector.extract_strided_slice %13 {offsets = [0, 0], sizes = [8, 8], strides = [1, 1]} : vector<8x32xbf16> to vector<8x8xbf16>
      %26 = vector.extract_strided_slice %15 {offsets = [0, 0], sizes = [8, 8], strides = [1, 1]} : vector<8x32xbf16> to vector<8x8xbf16>
      %cst = arith.constant dense<0.000000e+00> : vector<8x8xf32>
      %27 = tpu.matmul %25, %26, %cst {dimension_numbers = #tpu.dot_dimension_numbers<[1], [1], [0], [0], [0, 0, 1, 0], [], []>} : vector<8x8xbf16>, vector<8x8xbf16>, vector<8x8xf32> -> vector<8x8xf32>
      %cst_13 = arith.constant 0.353553385 : f32
      %28 = vector.broadcast %cst_13 : f32 to vector<8x8xf32>
      %29 = arith.mulf %27, %28 : vector<8x8xf32>
      %cst_14 = arith.constant -1.000000e+30 : f32
      %30 = vector.broadcast %cst_14 : f32 to vector<8x8xf32>
      %31 = arith.select %24, %29, %30 : vector<8x8xi1>, vector<8x8xf32>
      %c0_15 = arith.constant 0 : index
      %c0_16 = arith.constant 0 : index
      %32 = vector.load %arg7[%c0_15, %c0_16] : memref<8x4xf32, #tpu.memory_space<vmem>>, vector<8x1xf32>
      %cst_17 = arith.constant dense<0xFF800000> : vector<8xf32>
      %33 = vector.multi_reduction <maximumf>, %31, %cst_17 [1] : vector<8x8xf32> to vector<8xf32>
      %34 = vector.shape_cast %33 : vector<8xf32> to vector<8x1xf32>
      %35 = arith.maximumf %32, %34 : vector<8x1xf32>
      %36 = arith.subf %32, %35 : vector<8x1xf32>
      %37 = math.exp %36 : vector<8x1xf32>
      %38 = vector.broadcast %35 : vector<8x1xf32> to vector<8x8xf32>
      %39 = arith.subf %31, %38 : vector<8x8xf32>
      %40 = math.exp %39 : vector<8x8xf32>
      %c0_18 = arith.constant 0 : index
      %c0_19 = arith.constant 0 : index
      %41 = vector.load %arg8[%c0_18, %c0_19] : memref<8x4xf32, #tpu.memory_space<vmem>>, vector<8x1xf32>
      %42 = arith.mulf %37, %41 : vector<8x1xf32>
      %cst_20 = arith.constant dense<0.000000e+00> : vector<8xf32>
      %43 = vector.multi_reduction <add>, %40, %cst_20 [1] : vector<8x8xf32> to vector<8xf32>
      %44 = vector.shape_cast %43 : vector<8xf32> to vector<8x1xf32>
      %45 = arith.addf %42, %44 : vector<8x1xf32>
      %c0_21 = arith.constant 0 : index
      %c0_22 = arith.constant 0 : index
      %46 = vector.load %arg8[%c0_21, %c0_22] : memref<8x4xf32, #tpu.memory_space<vmem>>, vector<8x1xf32>
      tpu.vector_store %arg8[%c0_21, %c0_22], %45 {strides = array<i32>} : memref<8x4xf32, #tpu.memory_space<vmem>>, vector<8x1xf32>,
      %47 = arith.truncf %40 : vector<8x8xf32> to vector<8x8xbf16>
      %48 = vector.extract_strided_slice %17 {offsets = [0, 0], sizes = [8, 8], strides = [1, 1]} : vector<8x32xbf16> to vector<8x8xbf16>
      %cst_23 = arith.constant dense<0.000000e+00> : vector<8x8xf32>
      %49 = tpu.matmul %47, %48, %cst_23 {dimension_numbers = #tpu.dot_dimension_numbers<[1], [0], [0], [1], [0, 0, 1, 1], [], []>} : vector<8x8xbf16>, vector<8x8xbf16>, vector<8x8xf32> -> vector<8x8xf32>
      %c0_24 = arith.constant 0 : index
      %c0_25 = arith.constant 0 : index
      %50 = vector.load %arg9[%c0_24, %c0_25] : memref<8x32xf32, #tpu.memory_space<vmem>>, vector<8x8xf32>
      %51 = vector.broadcast %37 : vector<8x1xf32> to vector<8x8xf32>
      %52 = arith.mulf %51, %50 : vector<8x8xf32>
      %53 = arith.addf %52, %49 : vector<8x8xf32>
      %c0_26 = arith.constant 0 : index
      %c0_27 = arith.constant 0 : index
      %54 = vector.load %arg9[%c0_26, %c0_27] : memref<8x32xf32, #tpu.memory_space<vmem>>, vector<8x8xf32>
      tpu.vector_store %arg9[%c0_26, %c0_27], %53 {strides = array<i32>} : memref<8x32xf32, #tpu.memory_space<vmem>>, vector<8x8xf32>,
      %c0_28 = arith.constant 0 : index
      %c0_29 = arith.constant 0 : index
      %55 = vector.load %arg7[%c0_28, %c0_29] : memref<8x4xf32, #tpu.memory_space<vmem>>, vector<8x1xf32>
      tpu.vector_store %arg7[%c0_28, %c0_29], %35 {strides = array<i32>} : memref<8x4xf32, #tpu.memory_space<vmem>>, vector<8x1xf32>,
      %56 = vector.extract_strided_slice %13 {offsets = [0, 8], sizes = [8, 8], strides = [1, 1]} : vector<8x32xbf16> to vector<8x8xbf16>
      %57 = vector.extract_strided_slice %15 {offsets = [0, 8], sizes = [8, 8], strides = [1, 1]} : vector<8x32xbf16> to vector<8x8xbf16>
      %cst_30 = arith.constant dense<0.000000e+00> : vector<8x8xf32>
      %58 = tpu.matmul %56, %57, %cst_30 {dimension_numbers = #tpu.dot_dimension_numbers<[1], [1], [0], [0], [0, 0, 1, 0], [], []>} : vector<8x8xbf16>, vector<8x8xbf16>, vector<8x8xf32> -> vector<8x8xf32>
      %cst_31 = arith.constant 0.353553385 : f32
      %59 = vector.broadcast %cst_31 : f32 to vector<8x8xf32>
      %60 = arith.mulf %58, %59 : vector<8x8xf32>
      %cst_32 = arith.constant -1.000000e+30 : f32
      %61 = vector.broadcast %cst_32 : f32 to vector<8x8xf32>
      %62 = arith.select %24, %60, %61 : vector<8x8xi1>, vector<8x8xf32>
      %c0_33 = arith.constant 0 : index
      %c1 = arith.constant 1 : index
      %63 = vector.load %arg7[%c0_33, %c1] : memref<8x4xf32, #tpu.memory_space<vmem>>, vector<8x1xf32>
      %cst_34 = arith.constant dense<0xFF800000> : vector<8xf32>
      %64 = vector.multi_reduction <maximumf>, %62, %cst_34 [1] : vector<8x8xf32> to vector<8xf32>
      %65 = vector.shape_cast %64 : vector<8xf32> to vector<8x1xf32>
      %66 = arith.maximumf %63, %65 : vector<8x1xf32>
      %67 = arith.subf %63, %66 : vector<8x1xf32>
      %68 = math.exp %67 : vector<8x1xf32>
      %69 = vector.broadcast %66 : vector<8x1xf32> to vector<8x8xf32>
      %70 = arith.subf %62, %69 : vector<8x8xf32>
      %71 = math.exp %70 : vector<8x8xf32>
      %c0_35 = arith.constant 0 : index
      %c1_36 = arith.constant 1 : index
      %72 = vector.load %arg8[%c0_35, %c1_36] : memref<8x4xf32, #tpu.memory_space<vmem>>, vector<8x1xf32>
      %73 = arith.mulf %68, %72 : vector<8x1xf32>
      %cst_37 = arith.constant dense<0.000000e+00> : vector<8xf32>
      %74 = vector.multi_reduction <add>, %71, %cst_37 [1] : vector<8x8xf32> to vector<8xf32>
      %75 = vector.shape_cast %74 : vector<8xf32> to vector<8x1xf32>
      %76 = arith.addf %73, %75 : vector<8x1xf32>
      %c0_38 = arith.constant 0 : index
      %c1_39 = arith.constant 1 : index
      %77 = vector.load %arg8[%c0_38, %c1_39] : memref<8x4xf32, #tpu.memory_space<vmem>>, vector<8x1xf32>
      tpu.vector_store %arg8[%c0_38, %c1_39], %76 {strides = array<i32>} : memref<8x4xf32, #tpu.memory_space<vmem>>, vector<8x1xf32>,
      %78 = arith.truncf %71 : vector<8x8xf32> to vector<8x8xbf16>
      %79 = vector.extract_strided_slice %17 {offsets = [0, 8], sizes = [8, 8], strides = [1, 1]} : vector<8x32xbf16> to vector<8x8xbf16>
      %cst_40 = arith.constant dense<0.000000e+00> : vector<8x8xf32>
      %80 = tpu.matmul %78, %79, %cst_40 {dimension_numbers = #tpu.dot_dimension_numbers<[1], [0], [0], [1], [0, 0, 1, 1], [], []>} : vector<8x8xbf16>, vector<8x8xbf16>, vector<8x8xf32> -> vector<8x8xf32>
      %c0_41 = arith.constant 0 : index
      %c8 = arith.constant 8 : index
      %81 = vector.load %arg9[%c0_41, %c8] : memref<8x32xf32, #tpu.memory_space<vmem>>, vector<8x8xf32>
      %82 = vector.broadcast %68 : vector<8x1xf32> to vector<8x8xf32>
      %83 = arith.mulf %82, %81 : vector<8x8xf32>
      %84 = arith.addf %83, %80 : vector<8x8xf32>
      %c0_42 = arith.constant 0 : index
      %c8_43 = arith.constant 8 : index
      %85 = vector.load %arg9[%c0_42, %c8_43] : memref<8x32xf32, #tpu.memory_space<vmem>>, vector<8x8xf32>
      tpu.vector_store %arg9[%c0_42, %c8_43], %84 {strides = array<i32>} : memref<8x32xf32, #tpu.memory_space<vmem>>, vector<8x8xf32>,
      %c0_44 = arith.constant 0 : index
      %c1_45 = arith.constant 1 : index
      %86 = vector.load %arg7[%c0_44, %c1_45] : memref<8x4xf32, #tpu.memory_space<vmem>>, vector<8x1xf32>
      tpu.vector_store %arg7[%c0_44, %c1_45], %66 {strides = array<i32>} : memref<8x4xf32, #tpu.memory_space<vmem>>, vector<8x1xf32>,
      %87 = vector.extract_strided_slice %13 {offsets = [0, 16], sizes = [8, 8], strides = [1, 1]} : vector<8x32xbf16> to vector<8x8xbf16>
      %88 = vector.extract_strided_slice %15 {offsets = [0, 16], sizes = [8, 8], strides = [1, 1]} : vector<8x32xbf16> to vector<8x8xbf16>
      %cst_46 = arith.constant dense<0.000000e+00> : vector<8x8xf32>
      %89 = tpu.matmul %87, %88, %cst_46 {dimension_numbers = #tpu.dot_dimension_numbers<[1], [1], [0], [0], [0, 0, 1, 0], [], []>} : vector<8x8xbf16>, vector<8x8xbf16>, vector<8x8xf32> -> vector<8x8xf32>
      %cst_47 = arith.constant 0.353553385 : f32
      %90 = vector.broadcast %cst_47 : f32 to vector<8x8xf32>
      %91 = arith.mulf %89, %90 : vector<8x8xf32>
      %cst_48 = arith.constant -1.000000e+30 : f32
      %92 = vector.broadcast %cst_48 : f32 to vector<8x8xf32>
      %93 = arith.select %24, %91, %92 : vector<8x8xi1>, vector<8x8xf32>
      %c0_49 = arith.constant 0 : index
      %c2 = arith.constant 2 : index
      %94 = vector.load %arg7[%c0_49, %c2] : memref<8x4xf32, #tpu.memory_space<vmem>>, vector<8x1xf32>
      %cst_50 = arith.constant dense<0xFF800000> : vector<8xf32>
      %95 = vector.multi_reduction <maximumf>, %93, %cst_50 [1] : vector<8x8xf32> to vector<8xf32>
      %96 = vector.shape_cast %95 : vector<8xf32> to vector<8x1xf32>
      %97 = arith.maximumf %94, %96 : vector<8x1xf32>
      %98 = arith.subf %94, %97 : vector<8x1xf32>
      %99 = math.exp %98 : vector<8x1xf32>
      %100 = vector.broadcast %97 : vector<8x1xf32> to vector<8x8xf32>
      %101 = arith.subf %93, %100 : vector<8x8xf32>
      %102 = math.exp %101 : vector<8x8xf32>
      %c0_51 = arith.constant 0 : index
      %c2_52 = arith.constant 2 : index
      %103 = vector.load %arg8[%c0_51, %c2_52] : memref<8x4xf32, #tpu.memory_space<vmem>>, vector<8x1xf32>
      %104 = arith.mulf %99, %103 : vector<8x1xf32>
      %cst_53 = arith.constant dense<0.000000e+00> : vector<8xf32>
      %105 = vector.multi_reduction <add>, %102, %cst_53 [1] : vector<8x8xf32> to vector<8xf32>
      %106 = vector.shape_cast %105 : vector<8xf32> to vector<8x1xf32>
      %107 = arith.addf %104, %106 : vector<8x1xf32>
      %c0_54 = arith.constant 0 : index
      %c2_55 = arith.constant 2 : index
      %108 = vector.load %arg8[%c0_54, %c2_55] : memref<8x4xf32, #tpu.memory_space<vmem>>, vector<8x1xf32>
      tpu.vector_store %arg8[%c0_54, %c2_55], %107 {strides = array<i32>} : memref<8x4xf32, #tpu.memory_space<vmem>>, vector<8x1xf32>,
      %109 = arith.truncf %102 : vector<8x8xf32> to vector<8x8xbf16>
      %110 = vector.extract_strided_slice %17 {offsets = [0, 16], sizes = [8, 8], strides = [1, 1]} : vector<8x32xbf16> to vector<8x8xbf16>
      %cst_56 = arith.constant dense<0.000000e+00> : vector<8x8xf32>
      %111 = tpu.matmul %109, %110, %cst_56 {dimension_numbers = #tpu.dot_dimension_numbers<[1], [0], [0], [1], [0, 0, 1, 1], [], []>} : vector<8x8xbf16>, vector<8x8xbf16>, vector<8x8xf32> -> vector<8x8xf32>
      %c0_57 = arith.constant 0 : index
      %c16 = arith.constant 16 : index
      %112 = vector.load %arg9[%c0_57, %c16] : memref<8x32xf32, #tpu.memory_space<vmem>>, vector<8x8xf32>
      %113 = vector.broadcast %99 : vector<8x1xf32> to vector<8x8xf32>
      %114 = arith.mulf %113, %112 : vector<8x8xf32>
      %115 = arith.addf %114, %111 : vector<8x8xf32>
      %c0_58 = arith.constant 0 : index
      %c16_59 = arith.constant 16 : index
      %116 = vector.load %arg9[%c0_58, %c16_59] : memref<8x32xf32, #tpu.memory_space<vmem>>, vector<8x8xf32>
      tpu.vector_store %arg9[%c0_58, %c16_59], %115 {strides = array<i32>} : memref<8x32xf32, #tpu.memory_space<vmem>>, vector<8x8xf32>,
      %c0_60 = arith.constant 0 : index
      %c2_61 = arith.constant 2 : index
      %117 = vector.load %arg7[%c0_60, %c2_61] : memref<8x4xf32, #tpu.memory_space<vmem>>, vector<8x1xf32>
      tpu.vector_store %arg7[%c0_60, %c2_61], %97 {strides = array<i32>} : memref<8x4xf32, #tpu.memory_space<vmem>>, vector<8x1xf32>,
      %118 = vector.extract_strided_slice %13 {offsets = [0, 24], sizes = [8, 8], strides = [1, 1]} : vector<8x32xbf16> to vector<8x8xbf16>
      %119 = vector.extract_strided_slice %15 {offsets = [0, 24], sizes = [8, 8], strides = [1, 1]} : vector<8x32xbf16> to vector<8x8xbf16>
      %cst_62 = arith.constant dense<0.000000e+00> : vector<8x8xf32>
      %120 = tpu.matmul %118, %119, %cst_62 {dimension_numbers = #tpu.dot_dimension_numbers<[1], [1], [0], [0], [0, 0, 1, 0], [], []>} : vector<8x8xbf16>, vector<8x8xbf16>, vector<8x8xf32> -> vector<8x8xf32>
      %cst_63 = arith.constant 0.353553385 : f32
      %121 = vector.broadcast %cst_63 : f32 to vector<8x8xf32>
      %122 = arith.mulf %120, %121 : vector<8x8xf32>
      %cst_64 = arith.constant -1.000000e+30 : f32
      %123 = vector.broadcast %cst_64 : f32 to vector<8x8xf32>
      %124 = arith.select %24, %122, %123 : vector<8x8xi1>, vector<8x8xf32>
      %c0_65 = arith.constant 0 : index
      %c3 = arith.constant 3 : index
      %125 = vector.load %arg7[%c0_65, %c3] : memref<8x4xf32, #tpu.memory_space<vmem>>, vector<8x1xf32>
      %cst_66 = arith.constant dense<0xFF800000> : vector<8xf32>
      %126 = vector.multi_reduction <maximumf>, %124, %cst_66 [1] : vector<8x8xf32> to vector<8xf32>
      %127 = vector.shape_cast %126 : vector<8xf32> to vector<8x1xf32>
      %128 = arith.maximumf %125, %127 : vector<8x1xf32>
      %129 = arith.subf %125, %128 : vector<8x1xf32>
      %130 = math.exp %129 : vector<8x1xf32>
      %131 = vector.broadcast %128 : vector<8x1xf32> to vector<8x8xf32>
      %132 = arith.subf %124, %131 : vector<8x8xf32>
      %133 = math.exp %132 : vector<8x8xf32>
      %c0_67 = arith.constant 0 : index
      %c3_68 = arith.constant 3 : index
      %134 = vector.load %arg8[%c0_67, %c3_68] : memref<8x4xf32, #tpu.memory_space<vmem>>, vector<8x1xf32>
      %135 = arith.mulf %130, %134 : vector<8x1xf32>
      %cst_69 = arith.constant dense<0.000000e+00> : vector<8xf32>
      %136 = vector.multi_reduction <add>, %133, %cst_69 [1] : vector<8x8xf32> to vector<8xf32>
      %137 = vector.shape_cast %136 : vector<8xf32> to vector<8x1xf32>
      %138 = arith.addf %135, %137 : vector<8x1xf32>
      %c0_70 = arith.constant 0 : index
      %c3_71 = arith.constant 3 : index
      %139 = vector.load %arg8[%c0_70, %c3_71] : memref<8x4xf32, #tpu.memory_space<vmem>>, vector<8x1xf32>
      tpu.vector_store %arg8[%c0_70, %c3_71], %138 {strides = array<i32>} : memref<8x4xf32, #tpu.memory_space<vmem>>, vector<8x1xf32>,
      %140 = arith.truncf %133 : vector<8x8xf32> to vector<8x8xbf16>
      %141 = vector.extract_strided_slice %17 {offsets = [0, 24], sizes = [8, 8], strides = [1, 1]} : vector<8x32xbf16> to vector<8x8xbf16>
      %cst_72 = arith.constant dense<0.000000e+00> : vector<8x8xf32>
      %142 = tpu.matmul %140, %141, %cst_72 {dimension_numbers = #tpu.dot_dimension_numbers<[1], [0], [0], [1], [0, 0, 1, 1], [], []>} : vector<8x8xbf16>, vector<8x8xbf16>, vector<8x8xf32> -> vector<8x8xf32>
      %c0_73 = arith.constant 0 : index
      %c24 = arith.constant 24 : index
      %143 = vector.load %arg9[%c0_73, %c24] : memref<8x32xf32, #tpu.memory_space<vmem>>, vector<8x8xf32>
      %144 = vector.broadcast %130 : vector<8x1xf32> to vector<8x8xf32>
      %145 = arith.mulf %144, %143 : vector<8x8xf32>
      %146 = arith.addf %145, %142 : vector<8x8xf32>
      %c0_74 = arith.constant 0 : index
      %c24_75 = arith.constant 24 : index
      %147 = vector.load %arg9[%c0_74, %c24_75] : memref<8x32xf32, #tpu.memory_space<vmem>>, vector<8x8xf32>
      tpu.vector_store %arg9[%c0_74, %c24_75], %146 {strides = array<i32>} : memref<8x32xf32, #tpu.memory_space<vmem>>, vector<8x8xf32>,
      %c0_76 = arith.constant 0 : index
      %c3_77 = arith.constant 3 : index
      %148 = vector.load %arg7[%c0_76, %c3_77] : memref<8x4xf32, #tpu.memory_space<vmem>>, vector<8x1xf32>
      tpu.vector_store %arg7[%c0_76, %c3_77], %128 {strides = array<i32>} : memref<8x4xf32, #tpu.memory_space<vmem>>, vector<8x1xf32>,
    } else {
    }
    %c0_i32_3 = arith.constant 0 : i32
    %9 = arith.cmpi eq, %arg2, %c0_i32_3 : i32
    %10 = arith.extui %9 : i1 to i32
    %c0_i32_4 = arith.constant 0 : i32
    %11 = arith.cmpi ne, %10, %c0_i32_4 : i32
    scf.if %11 {
      %c0 = arith.constant 0 : index
      %c0_5 = arith.constant 0 : index
      %12 = vector.load %arg8[%c0, %c0_5] : memref<8x4xf32, #tpu.memory_space<vmem>>, vector<8x1xf32>
      %13 = tpu.reciprocal %12 {approx = true} : vector<8x1xf32> -> vector<8x1xf32>
      %c0_6 = arith.constant 0 : index
      %c0_7 = arith.constant 0 : index
      %14 = vector.load %arg9[%c0_6, %c0_7] : memref<8x32xf32, #tpu.memory_space<vmem>>, vector<8x8xf32>
      %15 = vector.broadcast %13 : vector<8x1xf32> to vector<8x8xf32>
      %16 = arith.mulf %14, %15 : vector<8x8xf32>
      %c0_8 = arith.constant 0 : index
      %c1 = arith.constant 1 : index
      %17 = vector.load %arg8[%c0_8, %c1] : memref<8x4xf32, #tpu.memory_space<vmem>>, vector<8x1xf32>
      %18 = tpu.reciprocal %17 {approx = true} : vector<8x1xf32> -> vector<8x1xf32>
      %c0_9 = arith.constant 0 : index
      %c8 = arith.constant 8 : index
      %19 = vector.load %arg9[%c0_9, %c8] : memref<8x32xf32, #tpu.memory_space<vmem>>, vector<8x8xf32>
      %20 = vector.broadcast %18 : vector<8x1xf32> to vector<8x8xf32>
      %21 = arith.mulf %19, %20 : vector<8x8xf32>
      %c0_10 = arith.constant 0 : index
      %c2 = arith.constant 2 : index
      %22 = vector.load %arg8[%c0_10, %c2] : memref<8x4xf32, #tpu.memory_space<vmem>>, vector<8x1xf32>
      %23 = tpu.reciprocal %22 {approx = true} : vector<8x1xf32> -> vector<8x1xf32>
      %c0_11 = arith.constant 0 : index
      %c16 = arith.constant 16 : index
      %24 = vector.load %arg9[%c0_11, %c16] : memref<8x32xf32, #tpu.memory_space<vmem>>, vector<8x8xf32>
      %25 = vector.broadcast %23 : vector<8x1xf32> to vector<8x8xf32>
      %26 = arith.mulf %24, %25 : vector<8x8xf32>
      %c0_12 = arith.constant 0 : index
      %c3 = arith.constant 3 : index
      %27 = vector.load %arg8[%c0_12, %c3] : memref<8x4xf32, #tpu.memory_space<vmem>>, vector<8x1xf32>
      %28 = tpu.reciprocal %27 {approx = true} : vector<8x1xf32> -> vector<8x1xf32>
      %c0_13 = arith.constant 0 : index
      %c24 = arith.constant 24 : index
      %29 = vector.load %arg9[%c0_13, %c24] : memref<8x32xf32, #tpu.memory_space<vmem>>, vector<8x8xf32>
      %30 = vector.broadcast %28 : vector<8x1xf32> to vector<8x8xf32>
      %31 = arith.mulf %29, %30 : vector<8x8xf32>
      %32 = tpu.concatenate %16, %21, %26, %31 in 1 : vector<8x8xf32>, vector<8x8xf32>, vector<8x8xf32>, vector<8x8xf32> -> vector<8x32xf32>
      %33 = arith.truncf %32 : vector<8x32xf32> to vector<8x32xbf16>
      %c0_14 = arith.constant 0 : index
      %c0_15 = arith.constant 0 : index
      %c0_16 = arith.constant 0 : index
      %34 = vector.load %arg6[%c0_14, %c0_15, %c0_16] : memref<1x8x32xbf16, #tpu.memory_space<vmem>>, vector<1x8x32xbf16>
      %35 = vector.shape_cast %34 : vector<1x8x32xbf16> to vector<8x32xbf16>
      %36 = vector.shape_cast %33 : vector<8x32xbf16> to vector<1x8x32xbf16>
      tpu.vector_store %arg6[%c0_14, %c0_15, %c0_16], %36 {strides = array<i32>} : memref<1x8x32xbf16, #tpu.memory_space<vmem>>, vector<1x8x32xbf16>,
    } else {
    }
    return
  }
  func.func @transform_0(%arg0: i32, %arg1: i32, %arg2: i32) -> (i32, i32, i32) {
    %c0_i32 = arith.constant 0 : i32
    %c0_i32_0 = arith.constant 0 : i32
    return %arg0, %arg1, %c0_i32 : i32, i32, i32
  }
  func.func @transform_1(%arg0: i32, %arg1: i32, %arg2: i32) -> (i32, i32, i32) {
    %c0_i32 = arith.constant 0 : i32
    %c0_i32_0 = arith.constant 0 : i32
    return %arg0, %arg2, %c0_i32 : i32, i32, i32
  }
  func.func @transform_2(%arg0: i32, %arg1: i32, %arg2: i32) -> (i32, i32, i32) {
    %c0_i32 = arith.constant 0 : i32
    %c0_i32_0 = arith.constant 0 : i32
    return %arg0, %arg2, %c0_i32 : i32, i32, i32
  }
  func.func @transform_3(%arg0: i32, %arg1: i32, %arg2: i32) -> (i32, i32, i32) {
    %c0_i32 = arith.constant 0 : i32
    %c0_i32_0 = arith.constant 0 : i32
    return %arg0, %arg1, %c0_i32 : i32, i32, i32
  }
}

module attributes {stable_mosaic.version = 11 : i64} {
  func.func @kernel(%arg0: i32, %arg1: i32, %arg2: memref<16x32xf32, #tpu.memory_space<vmem>>, %arg3: memref<1x32xf32, #tpu.memory_space<vmem>>, %arg4: memref<1x32xf32, #tpu.memory_space<vmem>>, %arg5: memref<32x128xbf16, #tpu.memory_space<vmem>>, %arg6: memref<1x128xf32, #tpu.memory_space<vmem>>, %arg7: memref<16x128xbf16, #tpu.memory_space<vmem>>) attributes {dimension_semantics = [#tpu.dimension_semantics<parallel>, #tpu.dimension_semantics<parallel>], iteration_bounds = array<i64: 1, 1>, scalar_prefetch = 0 : i64, scratch_operands = 0 : i64, tpu.core_type = #tpu.core_type<tc>, window_params = [{transform_indices = @transform_0, window_bounds = array<i64: 16, 32>}, {pipeline_mode = #tpu.pipeline_mode<synchronous>, transform_indices = @transform_1, window_bounds = array<i64: 1, 32>}, {pipeline_mode = #tpu.pipeline_mode<synchronous>, transform_indices = @transform_2, window_bounds = array<i64: 1, 32>}, {transform_indices = @transform_3, window_bounds = array<i64: 32, 128>}, {transform_indices = @transform_4, window_bounds = array<i64: 1, 128>}, {transform_indices = @transform_5, window_bounds = array<i64: 16, 128>}]} {
    %c0 = arith.constant 0 : index
    %c0_0 = arith.constant 0 : index
    %0 = vector.load %arg2[%c0, %c0_0] : memref<16x32xf32, #tpu.memory_space<vmem>>, vector<16x32xf32>
    %cst = arith.constant dense<0.000000e+00> : vector<16xf32>
    %1 = vector.multi_reduction <add>, %0, %cst [1] : vector<16x32xf32> to vector<16xf32>
    %2 = vector.shape_cast %1 : vector<16xf32> to vector<16x1xf32>
    %cst_1 = arith.constant 3.200000e+01 : f32
    %3 = vector.broadcast %cst_1 : f32 to vector<16x1xf32>
    %4 = arith.divf %2, %3 : vector<16x1xf32>
    %5 = vector.broadcast %4 : vector<16x1xf32> to vector<16x32xf32>
    %6 = arith.subf %0, %5 : vector<16x32xf32>
    %7 = arith.mulf %6, %6 : vector<16x32xf32>
    %cst_2 = arith.constant dense<0.000000e+00> : vector<16xf32>
    %8 = vector.multi_reduction <add>, %7, %cst_2 [1] : vector<16x32xf32> to vector<16xf32>
    %9 = vector.shape_cast %8 : vector<16xf32> to vector<16x1xf32>
    %cst_3 = arith.constant 3.200000e+01 : f32
    %10 = vector.broadcast %cst_3 : f32 to vector<16x1xf32>
    %11 = arith.divf %9, %10 : vector<16x1xf32>
    %12 = vector.broadcast %4 : vector<16x1xf32> to vector<16x32xf32>
    %13 = arith.subf %0, %12 : vector<16x32xf32>
    %cst_4 = arith.constant 9.99999974E-6 : f32
    %14 = vector.broadcast %cst_4 : f32 to vector<16x1xf32>
    %15 = arith.addf %11, %14 : vector<16x1xf32>
    %16 = math.rsqrt %15 : vector<16x1xf32>
    %17 = vector.broadcast %16 : vector<16x1xf32> to vector<16x32xf32>
    %18 = arith.mulf %13, %17 : vector<16x32xf32>
    %c0_5 = arith.constant 0 : index
    %c0_6 = arith.constant 0 : index
    %19 = vector.load %arg3[%c0_5, %c0_6] : memref<1x32xf32, #tpu.memory_space<vmem>>, vector<1x32xf32>
    %20 = vector.broadcast %19 : vector<1x32xf32> to vector<16x32xf32>
    %21 = arith.mulf %18, %20 : vector<16x32xf32>
    %c0_7 = arith.constant 0 : index
    %c0_8 = arith.constant 0 : index
    %22 = vector.load %arg4[%c0_7, %c0_8] : memref<1x32xf32, #tpu.memory_space<vmem>>, vector<1x32xf32>
    %23 = vector.broadcast %22 : vector<1x32xf32> to vector<16x32xf32>
    %24 = arith.addf %21, %23 : vector<16x32xf32>
    %25 = arith.truncf %24 : vector<16x32xf32> to vector<16x32xbf16>
    %c0_9 = arith.constant 0 : index
    %c0_10 = arith.constant 0 : index
    %26 = vector.load %arg5[%c0_9, %c0_10] : memref<32x128xbf16, #tpu.memory_space<vmem>>, vector<32x128xbf16>
    %cst_11 = arith.constant dense<0.000000e+00> : vector<16x128xf32>
    %27 = tpu.matmul %25, %26, %cst_11 {dimension_numbers = #tpu.dot_dimension_numbers<[1], [0], [0], [1], [0, 0, 1, 1], [], []>} : vector<16x32xbf16>, vector<32x128xbf16>, vector<16x128xf32> -> vector<16x128xf32>
    %c0_12 = arith.constant 0 : index
    %c0_13 = arith.constant 0 : index
    %28 = vector.load %arg6[%c0_12, %c0_13] : memref<1x128xf32, #tpu.memory_space<vmem>>, vector<1x128xf32>
    %29 = vector.broadcast %28 : vector<1x128xf32> to vector<16x128xf32>
    %30 = arith.addf %27, %29 : vector<16x128xf32>
    %31 = arith.mulf %30, %30 : vector<16x128xf32>
    %32 = arith.mulf %30, %31 : vector<16x128xf32>
    %cst_14 = arith.constant 4.471500e-02 : f32
    %33 = vector.broadcast %cst_14 : f32 to vector<16x128xf32>
    %34 = arith.mulf %33, %32 : vector<16x128xf32>
    %35 = arith.addf %30, %34 : vector<16x128xf32>
    %cst_15 = arith.constant 0.797884583 : f32
    %36 = vector.broadcast %cst_15 : f32 to vector<16x128xf32>
    %37 = arith.mulf %36, %35 : vector<16x128xf32>
    %38 = math.tanh %37 : vector<16x128xf32>
    %cst_16 = arith.constant 1.000000e+00 : f32
    %39 = vector.broadcast %cst_16 : f32 to vector<16x128xf32>
    %40 = arith.addf %39, %38 : vector<16x128xf32>
    %cst_17 = arith.constant 5.000000e-01 : f32
    %41 = vector.broadcast %cst_17 : f32 to vector<16x128xf32>
    %42 = arith.mulf %41, %40 : vector<16x128xf32>
    %43 = arith.mulf %30, %42 : vector<16x128xf32>
    %44 = arith.truncf %43 : vector<16x128xf32> to vector<16x128xbf16>
    %c0_18 = arith.constant 0 : index
    %c0_19 = arith.constant 0 : index
    %45 = vector.load %arg7[%c0_18, %c0_19] : memref<16x128xbf16, #tpu.memory_space<vmem>>, vector<16x128xbf16>
    tpu.vector_store %arg7[%c0_18, %c0_19], %44 {strides = array<i32>} : memref<16x128xbf16, #tpu.memory_space<vmem>>, vector<16x128xbf16>,
    return
  }
  func.func @transform_0(%arg0: i32, %arg1: i32) -> (i32, i32) {
    %c0_i32 = arith.constant 0 : i32
    %c0_i32_0 = arith.constant 0 : i32
    return %arg0, %c0_i32 : i32, i32
  }
  func.func @transform_1(%arg0: i32, %arg1: i32) -> (i32, i32) {
    %c0_i32 = arith.constant 0 : i32
    %c0_i32_0 = arith.constant 0 : i32
    %c0_i32_1 = arith.constant 0 : i32
    return %c0_i32, %c0_i32_0 : i32, i32
  }
  func.func @transform_2(%arg0: i32, %arg1: i32) -> (i32, i32) {
    %c0_i32 = arith.constant 0 : i32
    %c0_i32_0 = arith.constant 0 : i32
    %c0_i32_1 = arith.constant 0 : i32
    return %c0_i32, %c0_i32_0 : i32, i32
  }
  func.func @transform_3(%arg0: i32, %arg1: i32) -> (i32, i32) {
    %c0_i32 = arith.constant 0 : i32
    %c0_i32_0 = arith.constant 0 : i32
    return %c0_i32, %arg1 : i32, i32
  }
  func.func @transform_4(%arg0: i32, %arg1: i32) -> (i32, i32) {
    %c0_i32 = arith.constant 0 : i32
    %c0_i32_0 = arith.constant 0 : i32
    return %c0_i32, %arg1 : i32, i32
  }
  func.func @transform_5(%arg0: i32, %arg1: i32) -> (i32, i32) {
    %c0_i32 = arith.constant 0 : i32
    return %arg0, %arg1 : i32, i32
  }
}

module attributes {stable_mosaic.version = 11 : i64} {
  func.func @kernel(%arg0: i32, %arg1: i32, %arg2: memref<16x32xf32, #tpu.memory_space<vmem>>, %arg3: memref<1x32xf32, #tpu.memory_space<vmem>>, %arg4: memref<1x32xf32, #tpu.memory_space<vmem>>, %arg5: memref<32x64xbf16, #tpu.memory_space<vmem>>, %arg6: memref<16x64xf32, #tpu.memory_space<vmem>>) attributes {dimension_semantics = [#tpu.dimension_semantics<parallel>, #tpu.dimension_semantics<parallel>], iteration_bounds = array<i64: 1, 1>, scalar_prefetch = 0 : i64, scratch_operands = 0 : i64, tpu.core_type = #tpu.core_type<tc>, window_params = [{transform_indices = @transform_0, window_bounds = array<i64: 16, 32>}, {pipeline_mode = #tpu.pipeline_mode<synchronous>, transform_indices = @transform_1, window_bounds = array<i64: 1, 32>}, {pipeline_mode = #tpu.pipeline_mode<synchronous>, transform_indices = @transform_2, window_bounds = array<i64: 1, 32>}, {transform_indices = @transform_3, window_bounds = array<i64: 32, 64>}, {transform_indices = @transform_4, window_bounds = array<i64: 16, 64>}]} {
    %c0 = arith.constant 0 : index
    %c0_0 = arith.constant 0 : index
    %0 = vector.load %arg2[%c0, %c0_0] : memref<16x32xf32, #tpu.memory_space<vmem>>, vector<16x32xf32>
    %cst = arith.constant dense<0.000000e+00> : vector<16xf32>
    %1 = vector.multi_reduction <add>, %0, %cst [1] : vector<16x32xf32> to vector<16xf32>
    %2 = vector.shape_cast %1 : vector<16xf32> to vector<16x1xf32>
    %cst_1 = arith.constant 3.200000e+01 : f32
    %3 = vector.broadcast %cst_1 : f32 to vector<16x1xf32>
    %4 = arith.divf %2, %3 : vector<16x1xf32>
    %5 = vector.broadcast %4 : vector<16x1xf32> to vector<16x32xf32>
    %6 = arith.subf %0, %5 : vector<16x32xf32>
    %7 = arith.mulf %6, %6 : vector<16x32xf32>
    %cst_2 = arith.constant dense<0.000000e+00> : vector<16xf32>
    %8 = vector.multi_reduction <add>, %7, %cst_2 [1] : vector<16x32xf32> to vector<16xf32>
    %9 = vector.shape_cast %8 : vector<16xf32> to vector<16x1xf32>
    %cst_3 = arith.constant 3.200000e+01 : f32
    %10 = vector.broadcast %cst_3 : f32 to vector<16x1xf32>
    %11 = arith.divf %9, %10 : vector<16x1xf32>
    %12 = vector.broadcast %4 : vector<16x1xf32> to vector<16x32xf32>
    %13 = arith.subf %0, %12 : vector<16x32xf32>
    %cst_4 = arith.constant 9.99999974E-6 : f32
    %14 = vector.broadcast %cst_4 : f32 to vector<16x1xf32>
    %15 = arith.addf %11, %14 : vector<16x1xf32>
    %16 = math.rsqrt %15 : vector<16x1xf32>
    %17 = vector.broadcast %16 : vector<16x1xf32> to vector<16x32xf32>
    %18 = arith.mulf %13, %17 : vector<16x32xf32>
    %c0_5 = arith.constant 0 : index
    %c0_6 = arith.constant 0 : index
    %19 = vector.load %arg3[%c0_5, %c0_6] : memref<1x32xf32, #tpu.memory_space<vmem>>, vector<1x32xf32>
    %20 = vector.broadcast %19 : vector<1x32xf32> to vector<16x32xf32>
    %21 = arith.mulf %18, %20 : vector<16x32xf32>
    %c0_7 = arith.constant 0 : index
    %c0_8 = arith.constant 0 : index
    %22 = vector.load %arg4[%c0_7, %c0_8] : memref<1x32xf32, #tpu.memory_space<vmem>>, vector<1x32xf32>
    %23 = vector.broadcast %22 : vector<1x32xf32> to vector<16x32xf32>
    %24 = arith.addf %21, %23 : vector<16x32xf32>
    %25 = arith.truncf %24 : vector<16x32xf32> to vector<16x32xbf16>
    %c0_9 = arith.constant 0 : index
    %c0_10 = arith.constant 0 : index
    %26 = vector.load %arg5[%c0_9, %c0_10] : memref<32x64xbf16, #tpu.memory_space<vmem>>, vector<32x64xbf16>
    %cst_11 = arith.constant dense<0.000000e+00> : vector<16x64xf32>
    %27 = tpu.matmul %25, %26, %cst_11 {dimension_numbers = #tpu.dot_dimension_numbers<[1], [0], [0], [1], [0, 0, 1, 1], [], []>} : vector<16x32xbf16>, vector<32x64xbf16>, vector<16x64xf32> -> vector<16x64xf32>
    %c0_12 = arith.constant 0 : index
    %c0_13 = arith.constant 0 : index
    %28 = vector.load %arg6[%c0_12, %c0_13] : memref<16x64xf32, #tpu.memory_space<vmem>>, vector<16x64xf32>
    tpu.vector_store %arg6[%c0_12, %c0_13], %27 {strides = array<i32>} : memref<16x64xf32, #tpu.memory_space<vmem>>, vector<16x64xf32>,
    return
  }
  func.func @transform_0(%arg0: i32, %arg1: i32) -> (i32, i32) {
    %c0_i32 = arith.constant 0 : i32
    %c0_i32_0 = arith.constant 0 : i32
    return %arg0, %c0_i32 : i32, i32
  }
  func.func @transform_1(%arg0: i32, %arg1: i32) -> (i32, i32) {
    %c0_i32 = arith.constant 0 : i32
    %c0_i32_0 = arith.constant 0 : i32
    %c0_i32_1 = arith.constant 0 : i32
    return %c0_i32, %c0_i32_0 : i32, i32
  }
  func.func @transform_2(%arg0: i32, %arg1: i32) -> (i32, i32) {
    %c0_i32 = arith.constant 0 : i32
    %c0_i32_0 = arith.constant 0 : i32
    %c0_i32_1 = arith.constant 0 : i32
    return %c0_i32, %c0_i32_0 : i32, i32
  }
  func.func @transform_3(%arg0: i32, %arg1: i32) -> (i32, i32) {
    %c0_i32 = arith.constant 0 : i32
    %c0_i32_0 = arith.constant 0 : i32
    return %c0_i32, %arg1 : i32, i32
  }
  func.func @transform_4(%arg0: i32, %arg1: i32) -> (i32, i32) {
    %c0_i32 = arith.constant 0 : i32
    return %arg0, %arg1 : i32, i32
  }
}

module attributes {stable_mosaic.version = 11 : i64} {
  func.func @_matmul_bias_res_kernel(%arg0: i32, %arg1: i32, %arg2: i32, %arg3: memref<16x128xbf16, #tpu.memory_space<vmem>>, %arg4: memref<128x32xbf16, #tpu.memory_space<vmem>>, %arg5: memref<1x32xf32, #tpu.memory_space<vmem>>, %arg6: memref<16x32xf32, #tpu.memory_space<vmem>>, %arg7: memref<16x32xf32, #tpu.memory_space<vmem>>, %arg8: memref<16x32xf32, #tpu.memory_space<vmem>>) attributes {dimension_semantics = [#tpu.dimension_semantics<parallel>, #tpu.dimension_semantics<parallel>, #tpu.dimension_semantics<arbitrary>], iteration_bounds = array<i64: 1, 1, 1>, scalar_prefetch = 0 : i64, scratch_operands = 1 : i64, tpu.core_type = #tpu.core_type<tc>, window_params = [{transform_indices = @transform_0, window_bounds = array<i64: 16, 128>}, {transform_indices = @transform_1, window_bounds = array<i64: 128, 32>}, {transform_indices = @transform_2, window_bounds = array<i64: 1, 32>}, {transform_indices = @transform_3, window_bounds = array<i64: 16, 32>}, {transform_indices = @transform_4, window_bounds = array<i64: 16, 32>}]} {
    %c0_i32 = arith.constant 0 : i32
    %0 = arith.cmpi eq, %arg2, %c0_i32 : i32
    %1 = arith.extui %0 : i1 to i32
    %c0_i32_0 = arith.constant 0 : i32
    %2 = arith.cmpi ne, %1, %c0_i32_0 : i32
    scf.if %2 {
      %cst_10 = arith.constant 0.000000e+00 : f32
      %12 = vector.broadcast %cst_10 : f32 to vector<16x32xf32>
      %c0_11 = arith.constant 0 : index
      %c0_12 = arith.constant 0 : index
      %13 = vector.load %arg8[%c0_11, %c0_12] : memref<16x32xf32, #tpu.memory_space<vmem>>, vector<16x32xf32>
      tpu.vector_store %arg8[%c0_11, %c0_12], %12 {strides = array<i32>} : memref<16x32xf32, #tpu.memory_space<vmem>>, vector<16x32xf32>,
    } else {
    }
    %c0 = arith.constant 0 : index
    %c0_1 = arith.constant 0 : index
    %3 = vector.load %arg8[%c0, %c0_1] : memref<16x32xf32, #tpu.memory_space<vmem>>, vector<16x32xf32>
    %c0_2 = arith.constant 0 : index
    %c0_3 = arith.constant 0 : index
    %4 = vector.load %arg3[%c0_2, %c0_3] : memref<16x128xbf16, #tpu.memory_space<vmem>>, vector<16x128xbf16>
    %c0_4 = arith.constant 0 : index
    %c0_5 = arith.constant 0 : index
    %5 = vector.load %arg4[%c0_4, %c0_5] : memref<128x32xbf16, #tpu.memory_space<vmem>>, vector<128x32xbf16>
    %cst = arith.constant dense<0.000000e+00> : vector<16x32xf32>
    %6 = tpu.matmul %4, %5, %cst {dimension_numbers = #tpu.dot_dimension_numbers<[1], [0], [0], [1], [0, 0, 1, 1], [], []>} : vector<16x128xbf16>, vector<128x32xbf16>, vector<16x32xf32> -> vector<16x32xf32>
    %7 = arith.addf %3, %6 : vector<16x32xf32>
    %c0_6 = arith.constant 0 : index
    %c0_7 = arith.constant 0 : index
    %8 = vector.load %arg8[%c0_6, %c0_7] : memref<16x32xf32, #tpu.memory_space<vmem>>, vector<16x32xf32>
    tpu.vector_store %arg8[%c0_6, %c0_7], %7 {strides = array<i32>} : memref<16x32xf32, #tpu.memory_space<vmem>>, vector<16x32xf32>,
    %c0_i32_8 = arith.constant 0 : i32
    %9 = arith.cmpi eq, %arg2, %c0_i32_8 : i32
    %10 = arith.extui %9 : i1 to i32
    %c0_i32_9 = arith.constant 0 : i32
    %11 = arith.cmpi ne, %10, %c0_i32_9 : i32
    scf.if %11 {
      %c0_10 = arith.constant 0 : index
      %c0_11 = arith.constant 0 : index
      %12 = vector.load %arg8[%c0_10, %c0_11] : memref<16x32xf32, #tpu.memory_space<vmem>>, vector<16x32xf32>
      %c0_12 = arith.constant 0 : index
      %c0_13 = arith.constant 0 : index
      %13 = vector.load %arg5[%c0_12, %c0_13] : memref<1x32xf32, #tpu.memory_space<vmem>>, vector<1x32xf32>
      %14 = vector.broadcast %13 : vector<1x32xf32> to vector<16x32xf32>
      %15 = arith.addf %12, %14 : vector<16x32xf32>
      %c0_14 = arith.constant 0 : index
      %c0_15 = arith.constant 0 : index
      %16 = vector.load %arg6[%c0_14, %c0_15] : memref<16x32xf32, #tpu.memory_space<vmem>>, vector<16x32xf32>
      %17 = arith.addf %15, %16 : vector<16x32xf32>
      %c0_16 = arith.constant 0 : index
      %c0_17 = arith.constant 0 : index
      %18 = vector.load %arg7[%c0_16, %c0_17] : memref<16x32xf32, #tpu.memory_space<vmem>>, vector<16x32xf32>
      tpu.vector_store %arg7[%c0_16, %c0_17], %17 {strides = array<i32>} : memref<16x32xf32, #tpu.memory_space<vmem>>, vector<16x32xf32>,
    } else {
    }
    return
  }
  func.func @transform_0(%arg0: i32, %arg1: i32, %arg2: i32) -> (i32, i32) {
    %c0_i32 = arith.constant 0 : i32
    return %arg0, %arg2 : i32, i32
  }
  func.func @transform_1(%arg0: i32, %arg1: i32, %arg2: i32) -> (i32, i32) {
    %c0_i32 = arith.constant 0 : i32
    return %arg2, %arg1 : i32, i32
  }
  func.func @transform_2(%arg0: i32, %arg1: i32, %arg2: i32) -> (i32, i32) {
    %c0_i32 = arith.constant 0 : i32
    %c0_i32_0 = arith.constant 0 : i32
    return %c0_i32, %arg1 : i32, i32
  }
  func.func @transform_3(%arg0: i32, %arg1: i32, %arg2: i32) -> (i32, i32) {
    %c0_i32 = arith.constant 0 : i32
    return %arg0, %arg1 : i32, i32
  }
  func.func @transform_4(%arg0: i32, %arg1: i32, %arg2: i32) -> (i32, i32) {
    %c0_i32 = arith.constant 0 : i32
    return %arg0, %arg1 : i32, i32
  }
}

</mosaic_0001>

<bundles_post_ra>
// kernel: autoregressive_lm_forward.13
= control target key start
LH: loop header
LB: loop body
LE: loop exit
PB: predicated region body
PF: predicated region fallthrough
CT: control target
= control target key end

     0   :  { %vm22_vm0 = vcmask 261120   ;;  %v144_v0 = vmov 0.0   ;;  %vm145_vm1 = vmmov 0   ;;  %s202_s1 = inlined_call_operand.vmem [shape: bf16[32,32], index: 1, kind: input, shape index: {}]   ;;  %s203_s0 = inlined_call_operand.vmem [shape: bf16[16,32], index: 0, kind: input, shape index: {}]   ;;  %s204_s2 = inlined_call_operand.vmem [shape: f32[1,32], index: 2, kind: input, shape index: {}]   ;;  %s205_s3 = inlined_call_operand.vmem [shape: f32[16,32], index: 3, kind: input, shape index: {}]   ;;  %s206_s4 = inlined_call_operand.vmem [shape: f32[16,32], index: 4, kind: output, shape index: {}]  }
   0x1   :  { %131 = vmatprep.subr.bf16.mxu0 %v144_v0  ;;  %v141_v1 = vld [vmem:[%s202_s1 + $0x8] sm:$0xff]   ;;  %135 = vmatprep.mubr.msk.bf16.mxu0 %vm145_vm1, %v144_v0  ;;  %23 = vst.msk [vmem:[#allocation2] sm:$0xff] %vm22_vm0, %v144_v0  ;;  %24 = vst.msk [vmem:[#allocation2 + $0x8] sm:$0xff] %vm22_vm0, %v144_v0  ;;  %v142_v2 = vld [vmem:[%s202_s1] sm:$0xff]  }
   0x2   :  { %132 = vmatpush3.bf16.msra.mxu0 %v141_v1  ;;  %v143_v3 = vld [vmem:[%s203_s0] sm:$0xff]   ;;  %v114_v18 = vld [vmem:[%s205_s3 + $0x8] sm:$0xff] }
   0x3   :  { %133 = vmatprep.subr.bf16.mxu0 %v144_v0  ;;  %v127_v12 = vld [vmem:[%s204_s2] ss:$0 sm:$0xff] }
   0x4   :  { %v113_v14 = vld [vmem:[%s205_s3] sm:$0xff] }
   0x6   :  { %134 = vmatpush3.bf16.msra.mxu0 %v142_v2 }
   0x8   :  { %v25_v4 = vld [vmem:[#allocation2] sm:$0xff]  ;;  %v26_v8 = vld [vmem:[#allocation2 + $0x8] sm:$0xff] }
   0x9   :  { %136 = vmatmul.mubr.msk.bf16.vlgmr.msra.gmra.mxu0 %vm22_vm0, %v143_v3 }
  0xc9   :  { %v88_v5 = vpop.f32.mrf.mxu0 }
  0xca   :  { %v95_v6 = vadd.f32 %v88_v5, %v25_v4 }
  0xcb   :  { %v137_v7 = vpop.f32.mrf.mxu0 }
  0xcc   :  { %97 = vst.msk [vmem:[#allocation2] sm:$0xff] %vm22_vm0, %v95_v6 }
  0xcd   :  { %v91_v9 = vpop.f32.mrf.mxu0 }
  0xce   :  { %v96_v10 = vadd.f32 %v91_v9, %v26_v8 }
  0xcf   :  { %v138_v11 = vpop.f32.mrf.mxu0 }
  0xd0   :  { %98 = vst.msk [vmem:[#allocation2 + $0x8] sm:$0xff] %vm22_vm0, %v96_v10 }
  0xd3   :  { %v102_v13 = vld [vmem:[#allocation2] sm:$0xff] }
  0xd4   :  { %v111_v15 = vadd.f32 %v127_v12, %v102_v13 }
  0xd6   :  { %v115_v16 = vadd.f32 %v113_v14, %v111_v15 }
  0xd7   :  { %v103_v17 = vld [vmem:[#allocation2 + $0x8] sm:$0xff] }
  0xd8   :  { %117 = vst.msk [vmem:[%s206_s4] sm:$0xff] %vm22_vm0, %v115_v16  ;;  %v112_v19 = vadd.f32 %v127_v12, %v103_v17 }
  0xda   :  { %v116_v20 = vadd.f32 %v114_v18, %v112_v19 }
  0xdc   :  { %118 = vst.msk [vmem:[%s206_s4 + $0x8] sm:$0xff] %vm22_vm0, %v116_v20 }

// kernel: autoregressive_lm_forward.11
= control target key start
LH: loop header
LB: loop body
LE: loop exit
PB: predicated region body
PF: predicated region fallthrough
CT: control target
= control target key end

     0   :  { %vm38_vm0 = vcmask 261120   ;;  %v394_v14 = vmov 0.0   ;;  %vm395_vm1 = vmmov 0   ;;  %vm160_vm2 = vcmask 257024   ;;  %s529_s0 = inlined_call_operand.vmem [shape: f32[16,32], index: 0, kind: input, shape index: {}]   ;;  %s530_s3 = inlined_call_operand.vmem [shape: bf16[32,32], index: 3, kind: input, shape index: {}]   ;;  %s531_s5 = inlined_call_operand.vmem [shape: bf16[32,32], index: 5, kind: input, shape index: {}]   ;;  %s532_s7 = inlined_call_operand.vmem [shape: bf16[32,32], index: 7, kind: input, shape index: {}]   ;;  %s533_s1 = inlined_call_operand.vmem [shape: f32[1,32], index: 1, kind: input, shape index: {}]   ;;  %s534_s2 = inlined_call_operand.vmem [shape: f32[1,32], index: 2, kind: input, shape index: {}]   ;;  %s535_s4 = inlined_call_operand.vmem [shape: f32[1,32], index: 4, kind: input, shape index: {}]   ;;  %s536_s6 = inlined_call_operand.vmem [shape: f32[1,32], index: 6, kind: input, shape index: {}]   ;;  %s537_s9 = inlined_call_operand.vmem [shape: bf16[16,32], index: 9, kind: output, shape index: {0}]   ;;  %s538_s10 = inlined_call_operand.vmem [shape: bf16[16,32], index: 10, kind: output, shape index: {1}]   ;;  %s539_s8 = inlined_call_operand.vmem [shape: f32[1,32], index: 8, kind: input, shape index: {}]   ;;  %s540_s11 = inlined_call_operand.vmem [shape: bf16[16,32], index: 11, kind: output, shape index: {2}]  }
   0x1   :  { %v36_v0 = vld [vmem:[%s529_s0] sm:$0xff]  ;;  %v37_v1 = vld [vmem:[%s529_s0 + $0x8] sm:$0xff]  ;;  %358 = vmatprep.subr.bf16.mxu0 %v394_v14  ;;  %366 = vmatprep.subr.bf16.mxu1 %v394_v14 }
   0x2   :  { %v39_v2 = vsel %vm38_vm0, %v36_v0, 0.0  ;;  %v42_v3 = vsel %vm38_vm0, %v37_v1, 0.0  ;;  %v384_v15 = vld [vmem:[%s530_s3 + $0x8] sm:$0xff]   ;;  %362 = vmatprep.mubr.msk.bf16.mxu0 %vm395_vm1, %v394_v14  ;;  %370 = vmatprep.mubr.msk.bf16.mxu1 %vm395_vm1, %v394_v14  ;;  %v386_v17 = vld [vmem:[%s530_s3] sm:$0xff]  }
   0x3   :  { %40 = vadd.xlane.f32.xlu0 %v39_v2  ;;  %v385_v16 = vld [vmem:[%s531_s5 + $0x8] sm:$0xff]   ;;  %359 = vmatpush3.bf16.msra.mxu0 %v384_v15  ;;  %v387_v18 = vld [vmem:[%s531_s5] sm:$0xff]  }
   0x4   :  { %367 = vmatpush3.bf16.msra.mxu1 %v385_v16  ;;  %360 = vmatprep.subr.bf16.mxu0 %v394_v14  ;;  %v323_v27 = vld [vmem:[%s533_s1] ss:$0 sm:$0xff]  ;;  %v388_v35 = vld [vmem:[%s532_s7 + $0x8] sm:$0xff]  }
   0x5   :  { %368 = vmatprep.subr.bf16.mxu1 %v394_v14  ;;  %v324_v31 = vld [vmem:[%s534_s2] ss:$0 sm:$0xff] }
   0x6   :  { %v389_v37 = vld [vmem:[%s532_s7] sm:$0xff]  }
   0x7   :  { %43 = vadd.xlane.f32.xlu0 %v42_v3  ;;  %361 = vmatpush3.bf16.msra.mxu0 %v386_v17  ;;  %v325_v38 = vld [vmem:[%s535_s4] ss:$0 sm:$0xff] }
   0x8   :  { %369 = vmatpush3.bf16.msra.mxu1 %v387_v18  ;;  %374 = vmatprep.subr.bf16.mxu0 %v394_v14  ;;  %v331_v39 = vld [vmem:[%s536_s6] ss:$0 sm:$0xff] }
   0x9   :  { %v337_v54 = vld [vmem:[%s539_s8] ss:$0 sm:$0xff] }
  0x8c   :  { %v41_v4 = vpop.xlane.xlu0 %40 }
  0x8d   :  { %v46_v5 = vmul.f32 0.03125, %v41_v4 }
  0x8f   :  { %v48_v6 = vsub.f32 %v36_v0, %v46_v5 }
  0x90   :  { %v44_v7 = vpop.xlane.xlu0 %43 }
  0x91   :  { %v47_v8 = vmul.f32 0.03125, %v44_v7  ;;  %v50_v9 = vmul.f32 %v48_v6, %v48_v6 }
  0x93   :  { %v49_v10 = vsub.f32 %v37_v1, %v47_v8  ;;  %v52_v11 = vsel %vm38_vm0, %v50_v9, 0.0 }
  0x94   :  { %53 = vadd.xlane.f32.xlu1 %v52_v11 }
  0x95   :  { %v51_v12 = vmul.f32 %v49_v10, %v49_v10 }
  0x97   :  { %v55_v13 = vsel %vm38_vm0, %v51_v12, 0.0 }
  0x98   :  { %56 = vadd.xlane.f32.xlu1 %v55_v13 }
 0x11d   :  { %v54_v19 = vpop.xlane.xlu1 %53 }
 0x11e   :  { %v58_v20 = vmul.f32 0.03125, %v54_v19 }
 0x120   :  { %v60_v21 = vadd.f32 1e-05, %v58_v20 }
 0x121   :  { %v57_v22 = vpop.xlane.xlu1 %56 }
 0x122   :  { %390 = vrsqrt.f32 %v60_v21  ;;  %v59_v23 = vmul.f32 0.03125, %v57_v22 }
 0x124   :  { %v61_v24 = vadd.f32 1e-05, %v59_v23 }
 0x126   :  { %392 = vrsqrt.f32 %v61_v24 }
 0x12f   :  { %v391_v25 = vpop.eup %390 }
 0x130   :  { %v64_v26 = vmul.f32 %v391_v25, %v48_v6 }
 0x132   :  { %v73_v30 = vmul.f32 %v323_v27, %v64_v26 }
 0x133   :  { %v393_v28 = vpop.eup %392 }
 0x134   :  { %v65_v29 = vmul.f32 %v393_v28, %v49_v10  ;;  %v82_v33 = vadd.f32 %v324_v31, %v73_v30 }
 0x136   :  { %v74_v32 = vmul.f32 %v323_v27, %v65_v29 }
 0x138   :  { %v83_v34 = vadd.f32 %v324_v31, %v74_v32 }
 0x13a   :  { %v84_v36 = vpack.c.bf16 %v83_v34, %v82_v33 }
 0x13c   :  { %363 = vmatmul.mubr.msk.bf16.vlgmr.msra.gmra.mxu0 %vm38_vm0, %v84_v36  ;;  %371 = vmatmul.mubr.msk.bf16.vlgmr.msra.gmra.mxu1 %vm38_vm0, %v84_v36 }
 0x13d   :  { %375 = vmatpush3.bf16.msra.mxu0 %v388_v35  ;;  %378 = vmatprep.mubr.msk.bf16.mxu0 %vm395_vm1, %v394_v14 }
 0x13e   :  { %376 = vmatprep.subr.bf16.mxu0 %v394_v14 }
 0x141   :  { %377 = vmatpush3.bf16.msra.mxu0 %v389_v37 }
 0x144   :  { %379 = vmatmul.mubr.msk.bf16.vlgmr.msra.gmra.mxu0 %vm38_vm0, %v84_v36 }
 0x1fc   :  { %v145_v40 = vpop.f32.mrf.mxu0  ;;  %v220_v41 = vpop.f32.mrf.mxu1 }
 0x1fd   :  { %v146_v42 = vadd.f32 %v325_v38, %v145_v40  ;;  %v221_v43 = vadd.f32 %v331_v39, %v220_v41 }
 0x1fe   :  { %v364_v44 = vpop.f32.mrf.mxu0  ;;  %v372_v45 = vpop.f32.mrf.mxu1 }
 0x1ff   :  { %v343_v46 = vpack.c.bf16 %v146_v42, %v146_v42  ;;  %v345_v47 = vpack.c.bf16 %v221_v43, %v221_v43 }
 0x200   :  { %v148_v48 = vpop.f32.mrf.mxu0  ;;  %v223_v49 = vpop.f32.mrf.mxu1 }
 0x201   :  { %161 = vst.msk [vmem:[%s537_s9] sm:$0xf] %vm160_vm2, %v343_v46  ;;  %235 = vst.msk [vmem:[%s538_s10] sm:$0xf] %vm160_vm2, %v345_v47  ;;  %v149_v50 = vadd.f32 %v325_v38, %v148_v48  ;;  %v224_v51 = vadd.f32 %v331_v39, %v223_v49 }
 0x202   :  { %v365_v52 = vpop.f32.mrf.mxu0  ;;  %v373_v53 = vpop.f32.mrf.mxu1 }
 0x203   :  { %v344_v55 = vpack.c.bf16 %v149_v50, %v149_v50  ;;  %v346_v56 = vpack.c.bf16 %v224_v51, %v224_v51 }
 0x204   :  { %v294_v57 = vpop.f32.mrf.mxu0 }
 0x205   :  { %162 = vst.msk [vmem:[%s537_s9 + $0x4] sm:$0xf] %vm160_vm2, %v344_v55  ;;  %236 = vst.msk [vmem:[%s538_s10 + $0x4] sm:$0xf] %vm160_vm2, %v346_v56  ;;  %v295_v58 = vadd.f32 %v337_v54, %v294_v57 }
 0x206   :  { %v380_v59 = vpop.f32.mrf.mxu0 }
 0x207   :  { %v347_v60 = vpack.c.bf16 %v295_v58, %v295_v58 }
 0x208   :  { %v297_v61 = vpop.f32.mrf.mxu0 }
 0x209   :  { %309 = vst.msk [vmem:[%s540_s11] sm:$0xf] %vm160_vm2, %v347_v60  ;;  %v298_v62 = vadd.f32 %v337_v54, %v297_v61 }
 0x20a   :  { %v381_v63 = vpop.f32.mrf.mxu0 }
 0x20b   :  { %v348_v0 = vpack.c.bf16 %v298_v62, %v298_v62 }
 0x20d   :  { %310 = vst.msk [vmem:[%s540_s11 + $0x4] sm:$0xf] %vm160_vm2, %v348_v0 }

// kernel: autoregressive_lm_forward.14
= control target key start
LH: loop header
LB: loop body
LE: loop exit
PB: predicated region body
PF: predicated region fallthrough
CT: control target
= control target key end

     0   :  { %vm23_vm0 = vcmask 261120   ;;  %v207_v14 = vmov 0.0   ;;  %vm208_vm1 = vmmov 0   ;;  %s268_s0 = inlined_call_operand.vmem [shape: f32[16,32], index: 0, kind: input, shape index: {}]   ;;  %s269_s3 = inlined_call_operand.vmem [shape: bf16[32,128], index: 3, kind: input, shape index: {}]   ;;  %s270_s1 = inlined_call_operand.vmem [shape: f32[1,32], index: 1, kind: input, shape index: {}]   ;;  %s271_s2 = inlined_call_operand.vmem [shape: f32[1,32], index: 2, kind: input, shape index: {}]   ;;  %s272_s4 = inlined_call_operand.vmem [shape: f32[1,128], index: 4, kind: input, shape index: {}]   ;;  %s273_s5 = inlined_call_operand.vmem [shape: bf16[16,128], index: 5, kind: output, shape index: {}]  }
   0x1   :  { %v21_v0 = vld [vmem:[%s268_s0] sm:$0xff]  ;;  %v22_v1 = vld [vmem:[%s268_s0 + $0x8] sm:$0xff]  ;;  %187 = vmatprep.subr.bf16.mxu0 %v207_v14  ;;  %191 = vmatprep.mubr.msk.bf16.mxu0 %vm208_vm1, %v207_v14 }
   0x2   :  { %v24_v2 = vsel %vm23_vm0, %v21_v0, 0.0  ;;  %v27_v3 = vsel %vm23_vm0, %v22_v1, 0.0  ;;  %v197_v15 = vld [vmem:[%s269_s3 + $0x8] sm:$0xff]   ;;  %v198_v16 = vld [vmem:[%s269_s3] sm:$0xff]  }
   0x3   :  { %25 = vadd.xlane.f32.xlu0 %v24_v2  ;;  %188 = vmatpush3.bf16.msra.mxu0 %v197_v15  ;;  %v169_v25 = vld [vmem:[%s270_s1] ss:$0 sm:$0xff] }
   0x4   :  { %189 = vmatprep.subr.bf16.mxu0 %v207_v14  ;;  %v170_v29 = vld [vmem:[%s271_s2] ss:$0 sm:$0xff] }
   0x5   :  { %v171_v34 = vld [vmem:[%s272_s4] ss:$0 sm:$0xff] }
   0x7   :  { %28 = vadd.xlane.f32.xlu0 %v27_v3  ;;  %190 = vmatpush3.bf16.msra.mxu0 %v198_v16 }
  0x8c   :  { %v26_v4 = vpop.xlane.xlu0 %25 }
  0x8d   :  { %v31_v5 = vmul.f32 0.03125, %v26_v4 }
  0x8f   :  { %v33_v6 = vsub.f32 %v21_v0, %v31_v5 }
  0x90   :  { %v29_v7 = vpop.xlane.xlu0 %28 }
  0x91   :  { %v32_v8 = vmul.f32 0.03125, %v29_v7  ;;  %v35_v9 = vmul.f32 %v33_v6, %v33_v6 }
  0x93   :  { %v34_v10 = vsub.f32 %v22_v1, %v32_v8  ;;  %v37_v11 = vsel %vm23_vm0, %v35_v9, 0.0 }
  0x94   :  { %38 = vadd.xlane.f32.xlu1 %v37_v11 }
  0x95   :  { %v36_v12 = vmul.f32 %v34_v10, %v34_v10 }
  0x97   :  { %v40_v13 = vsel %vm23_vm0, %v36_v12, 0.0 }
  0x98   :  { %41 = vadd.xlane.f32.xlu1 %v40_v13 }
 0x11d   :  { %v39_v17 = vpop.xlane.xlu1 %38 }
 0x11e   :  { %v43_v18 = vmul.f32 0.03125, %v39_v17 }
 0x120   :  { %v45_v19 = vadd.f32 1e-05, %v43_v18 }
 0x121   :  { %v42_v20 = vpop.xlane.xlu1 %41 }
 0x122   :  { %199 = vrsqrt.f32 %v45_v19  ;;  %v44_v21 = vmul.f32 0.03125, %v42_v20 }
 0x124   :  { %v46_v22 = vadd.f32 1e-05, %v44_v21 }
 0x126   :  { %201 = vrsqrt.f32 %v46_v22 }
 0x12f   :  { %v200_v23 = vpop.eup %199 }
 0x130   :  { %v49_v24 = vmul.f32 %v200_v23, %v33_v6 }
 0x132   :  { %v58_v28 = vmul.f32 %v169_v25, %v49_v24 }
 0x133   :  { %v202_v26 = vpop.eup %201 }
 0x134   :  { %v50_v27 = vmul.f32 %v202_v26, %v34_v10  ;;  %v67_v31 = vadd.f32 %v170_v29, %v58_v28 }
 0x136   :  { %v59_v30 = vmul.f32 %v169_v25, %v50_v27 }
 0x138   :  { %v68_v32 = vadd.f32 %v170_v29, %v59_v30 }
 0x13a   :  { %v69_v33 = vpack.c.bf16 %v68_v32, %v67_v31 }
 0x13c   :  { %192 = vmatmul.mubr.msk.bf16.vlgmr.msra.gmra.mxu0 %vm23_vm0, %v69_v33 }
 0x1fc   :  { %v130_v35 = vpop.f32.mrf.mxu0 }
 0x1fd   :  { %v131_v36 = vadd.f32 %v171_v34, %v130_v35 }
 0x1fe   :  { %v193_v37 = vpop.f32.mrf.mxu0 }
 0x1ff   :  { %v137_v38 = vmul.f32 %v131_v36, %v131_v36 }
 0x200   :  { %v133_v39 = vpop.f32.mrf.mxu0 }
 0x201   :  { %v139_v40 = vmul.f32 %v137_v38, %v131_v36  ;;  %v134_v41 = vadd.f32 %v171_v34, %v133_v39 }
 0x202   :  { %v194_v42 = vpop.f32.mrf.mxu0 }
 0x203   :  { %v141_v43 = vmul.f32 0.044715, %v139_v40  ;;  %v138_v44 = vmul.f32 %v134_v41, %v134_v41 }
 0x205   :  { %v143_v45 = vadd.f32 %v141_v43, %v131_v36  ;;  %v140_v46 = vmul.f32 %v138_v44, %v134_v41 }
 0x207   :  { %v145_v47 = vmul.f32 0.7978846, %v143_v45  ;;  %v142_v48 = vmul.f32 0.044715, %v140_v46 }
 0x209   :  { %203 = vtanh.f32 %v145_v47  ;;  %v144_v49 = vadd.f32 %v142_v48, %v134_v41 }
 0x20b   :  { %v146_v50 = vmul.f32 0.7978846, %v144_v49 }
 0x20d   :  { %205 = vtanh.f32 %v146_v50 }
 0x216   :  { %v204_v51 = vpop.eup %203 }
 0x217   :  { %v149_v52 = vadd.f32 1.0, %v204_v51 }
 0x219   :  { %v151_v54 = vmul.f32 0.5, %v149_v52 }
 0x21a   :  { %v206_v53 = vpop.eup %205 }
 0x21b   :  { %v150_v55 = vadd.f32 1.0, %v206_v53  ;;  %v153_v57 = vmul.f32 %v151_v54, %v131_v36 }
 0x21d   :  { %v152_v56 = vmul.f32 0.5, %v150_v55 }
 0x21f   :  { %v154_v58 = vmul.f32 %v152_v56, %v134_v41 }
 0x221   :  { %v182_v59 = vpack.c.bf16 %v154_v58, %v153_v57 }
 0x223   :  { %183 = vst [vmem:[%s273_s5] sm:$0xff] %v182_v59  }

// kernel: autoregressive_lm_forward.12
= control target key start
LH: loop header
LB: loop body
LE: loop exit
PB: predicated region body
PF: predicated region fallthrough
CT: control target
= control target key end

     0   :  { %s1205_s12 = smov 0   ;;  %s1207_s13 = smov 0   ;;  %s1415_s0 = inlined_call_operand.vmem [shape: bf16[2,8,32], index: 0, kind: input, shape index: {}]   ;;  %s1416_s1 = inlined_call_operand.vmem [shape: bf16[2,8,32], index: 1, kind: input, shape index: {}]   ;;  %s1417_s2 = inlined_call_operand.vmem [shape: bf16[2,8,32], index: 2, kind: input, shape index: {}]   ;;  %s1418_s3 = inlined_call_operand.vmem [shape: bf16[2,8,32], index: 3, kind: output, shape index: {}]  }
   0x1   :  { %s1209_s14 = smov 0  }
   0x2 LB: > { %s32_s15 = sadd.s32 1, %s1166_s13  ;;  %p996_p0 = scmp.ge.s32.totalorder %s1170_s14, 1  ;;  %s1170_s14 = sphi %s1209_s14, %s13_s14   ;;  %s1166_s13 = sphi %s1207_s13, %s1420_s13   ;;  %s1162_s12 = sphi %s1205_s12, %s1419_s12  }
   0x3   : > { %p34_p1 = scmp.ge.s32.totalorder %s32_s15, 2  ;;  %p190_p2 = scmp.lt.s32.totalorder %s1170_s14, 3 }
   0x5   : > { %s1422_s15 = smov (%p34_p1, %s32_s15), 0  ;;  %p191_p3 = pnand %p996_p0, %p190_p2 }
   0x6   : > { %p232_p4 = scmp.lt.s32.totalorder (!%p191_p3), %s1162_s12, 1  ;;  %s1176_s23 = smov (!%p191_p3), 120  }
   0x7   : > { %194 = sbr.rel (%p191_p3) target bundleno = 1352 (0x548), region = 32  ;;  %s1177_s24 = smov (!%p191_p3), 112  }
   0x8   : > { %s1178_s25 = smov (!%p191_p3), 104   ;;  %s1182_s29 = smov (!%p191_p3), 8  }
   0x9   : > { %s1183_s30 = smov (!%p191_p3), 16   ;;  %s1184_s4 = smov (!%p191_p3), 24  }
   0xc   : > { %v1172_v0 = vmov 0.0   ;;  %vm1173_vm0 = vmmov 0   ;;  %s1424_s12 = smov (!%p232_p4, %s1162_s12), 1  ;;  %vm289_vm1 = vcmask 64512   ;;  %vm267_vm2 = vcmask 31744  }
   0xd   : > { %1030 = vmatprep.subr.bf16.mxu0 %v1172_v0  ;;  %1032 = vmatprep.mubr.msk.bf16.mxu0 %vm1173_vm0, %v1172_v0  ;;  %s1229_s16 = sshll.u32 %s1424_s12, 2  ;;  %v1174_v4 = vmov -1e+30   ;;  %269 = vst.msk [vmem:[#allocation3] sm:$0xff] %vm267_vm2, %v1172_v0  ;;  %v280_v5 = vlaneseq  ;;  %v1175_v15 = vmov 0   ;;  %vm360_vm4 = vcmask 7168  }
   0xe   : > { %1036 = vmatprep.subr.bf16.mxu1 %v1172_v0  ;;  %1038 = vmatprep.mubr.msk.bf16.mxu1 %vm1173_vm0, %v1172_v0  ;;  %s245_s19 = scalar_lea.vmem %s1416_s1, %s1229_s16  ;;  %s238_s22 = scalar_lea.vmem %s1415_s0, %s1229_s16  ;;  %268 = vst.msk [vmem:[#allocation2] sm:$0xff] %vm267_vm2, %v1174_v4  ;;  %vm366_vm5 = vcmask 1043456   ;;  %v1179_v57 = vmov 1   ;;  %vm500_vm6 = vcmask 15368   ;;  %vm270_vm7 = vcmask 261120  }
   0xf   : > { %v278_v1 = vld [vmem:[%s245_s19] sm:$0xf]  ;;  %v1245_v6 = vshrl.u32 %v280_v5, 7  ;;  %v1247_v7 = vand.u32 127, %v280_v5  ;;  %1115 = vset.pattern.permute.xlu0 %v1175_v15  ;;  %s252_s28 = scalar_lea.vmem %s1417_s2, %s1229_s16  ;;  %1116 = vset.pattern.permute.xlu1 %v1179_v57  ;;  %271 = vst.msk [vmem:[#allocation4] sm:$0xff] %vm270_vm7, %v1172_v0  ;;  %vm643_vm8 = vcmask 23568   ;;  %s259_s7 = scalar_lea.vmem %s1418_s3, %s1229_s16 }
  0x10   : > { %v294_v2 = vsel %vm289_vm1, %v278_v1, 0  ;;  %v277_v3 = vld [vmem:[%s238_s22] sm:$0xf]  ;;  %v1004_v16 = vcombine.low %v278_v1, %v278_v1  ;;  %v1180_v1 = vmov 2   ;;  %vm783_vm9 = vcmask 31768  }
  0x11   : > { %1031 = vmatpush3.bf16.xpose.msra.mxu0 %v294_v2  ;;  %vm288_vm3 = vcmp.le.s32.totalorder %v1247_v7, %v1245_v6  ;;  %v1003_v17 = vcombine.low %v277_v3, %v277_v3  ;;  %v1276_v22 = vld [vmem:[%s252_s28] sm:$0xf]  ;;  %vm566_vm10 = vcmask 130112   ;;  %vm706_vm11 = vcmask 195712  }
  0x12   : > { %1048 = vmatprep.subr.bf16.mxu0 %v1172_v0  ;;  %428 = vrot.lane.b32.xlu1 %v1004_v16, %s1176_s23  ;;  %v368_v23 = vsel %vm366_vm5, %v1276_v22, 0  ;;  %v1006_v6 = vcombine.low %v1276_v22, %v1276_v22  ;;  %vm846_vm12 = vcmask 261312   ;;  %vm878_vm13 = vcmask 130048  }
  0x13   : > { %1037 = vmatpush3.bf16.msra.mxu1 %v368_v23  ;;  %vm880_vm14 = vcmask 195584   ;;  %vm883_vm15 = vcmask 257024  }
  0x14   : > { %1042 = vmatprep.subr.bf16.mxu1 %v1172_v0 }
  0x15   : > { %v1262_v18 = vld [vmem:[#allocation2] sm:$0xff] }
  0x16   : > { %423 = vrot.lane.b32.xlu1 %v1003_v17, %s1176_s23 }
  0x18   : > { %1033 = vmatmul.mubr.msk.bf16.vlgmr.msra.gmra.mxu0 %vm289_vm1, %v277_v3 }
  0x19   : > { %1050 = vmatprep.mubr.msk.bf16.mxu0 %vm1173_vm0, %v1172_v0 }
  0x1a   : > { %571 = vrot.lane.b32.xlu1 %v1004_v16, %s1177_s24 }
  0x1e   : > { %569 = vrot.lane.b32.xlu1 %v1003_v17, %s1177_s24 }
  0x22   : > { %711 = vrot.lane.b32.xlu1 %v1004_v16, %s1178_s25 }
  0x26   : > { %709 = vrot.lane.b32.xlu1 %v1003_v17, %s1178_s25 }
  0x84   : > { %v429_v27 = vpop.permute.xlu1 %428 }
  0x85   : > { %v434_v30 = vsel %vm289_vm1, %v429_v27, 0 }
  0x88   : > { %v424_v28 = vpop.permute.xlu1 %423 }
  0x8c   : > { %v572_v32 = vpop.permute.xlu1 %571 }
  0x8d   : > { %v577_v34 = vsel %vm289_vm1, %v572_v32, 0 }
  0x90   : > { %v570_v33 = vpop.permute.xlu1 %569 }
  0x94   : > { %v712_v35 = vpop.permute.xlu1 %711 }
  0x95   : > { %v717_v36 = vsel %vm289_vm1, %v712_v35, 0 }
  0x98   : > { %v710_v37 = vpop.permute.xlu1 %709 }
  0xd8   : > { %v330_v8 = vpop.f32.mrf.mxu0 }
  0xd9   : > { %v336_v9 = vmul.f32 0.35355338, %v330_v8 }
  0xda   : > { %v1034_v10 = vpop.f32.mrf.mxu0 }
  0xdb   : > { %v337_v11 = vsel %vm288_vm3, %v336_v9, -1e+30  ;;  %v1181_v9 = vmov 3  }
  0xdc   : > { %v333_v12 = vpop.f32.mrf.mxu0  ;;  %v339_v13 = vsel %vm289_vm1, %v337_v11, -inf }
  0xdd   : > { %340 = vmax.xlane.f32.xlu0 %v339_v13 }
  0xde   : > { %v1035_v14 = vpop.f32.mrf.mxu0 }
 0x166   : > { %v341_v19 = vpop.xlane.xlu0 %340 }
 0x167   : > { %v1265_v20 = vmax.f32 %v1262_v18, %v341_v19 }
 0x169   : > { %v343_v21 = vsub.f32 %v1262_v18, %v1265_v20  ;;  %419 = vst.msk [vmem:[#allocation2] sm:$0xff] %vm360_vm4, %v1265_v20  ;;  %348 = vperm.xlu0 %1115, %v1265_v20  }
 0x16b   : > { %v344_v2 = vmul.f32 1.442695, %v343_v21 }
 0x16d   : > { %1117 = vset.pattern.permute.xlu0 %v1180_v1 }
 0x170   : > { %v1328_v4 = vld [vmem:[#allocation2] sm:$0xff] }
 0x1e4   : > { %v349_v24 = vpop.permute.xlu0 %348 }
 0x1e5   : > { %v351_v25 = vsub.f32 %v337_v11, %v349_v24 }
 0x1e7   : > { %v352_v26 = vmul.f32 1.442695, %v351_v25 }
 0x1e9   : > { %1130 = vpow2.f32 %v352_v26 }
 0x1ea   : > { %1132 = vpow2.f32 %v344_v2 }
 0x1f6   : > { %v1281_v29 = vpop.eup %1130 }
 0x1f7   : > { %v362_v31 = vpack.c.bf16 %v1281_v29, %v1281_v29  ;;  %v1344_v13 = vpop.eup %1132  ;;  %v356_v19 = vsel %vm289_vm1, %v1281_v29, 0.0 }
 0x1f9   : > { %1039 = vmatmul.mubr.msk.bf16.vlgmr.msra.gmra.mxu1 %vm289_vm1, %v362_v31 }
 0x1fa   : > { %1043 = vmatpush3.bf16.xpose.msra.mxu1 %v434_v30  ;;  %1044 = vmatprep.mubr.msk.bf16.mxu1 %vm1173_vm0, %v1172_v0 }
 0x1fb   : > { %1054 = vmatprep.subr.bf16.mxu1 %v1172_v0 }
 0x201   : > { %1045 = vmatmul.mubr.msk.bf16.vlgmr.msra.gmra.mxu1 %vm289_vm1, %v424_v28  ;;  %v410_v28 = vld [vmem:[#allocation4] sm:$0xff] }
 0x202   : > { %1055 = vmatpush3.bf16.xpose.msra.mxu1 %v577_v34  ;;  %1056 = vmatprep.mubr.msk.bf16.mxu1 %vm1173_vm0, %v1172_v0 }
 0x203   : > { %1066 = vmatprep.subr.bf16.mxu1 %v1172_v0 }
 0x209   : > { %1057 = vmatmul.mubr.msk.bf16.vlgmr.msra.gmra.mxu1 %vm289_vm1, %v570_v33 }
 0x20a   : > { %1067 = vmatpush3.bf16.xpose.msra.mxu1 %v717_v36  ;;  %1068 = vmatprep.mubr.msk.bf16.mxu1 %vm1173_vm0, %v1172_v0 }
 0x211   : > { %1069 = vmatmul.mubr.msk.bf16.vlgmr.msra.gmra.mxu1 %vm289_vm1, %v710_v37 }
 0x2b9   : > { %v1300_v38 = vpop.f32.mrf.mxu1 }
 0x2bb   : > { %v1040_v39 = vpop.f32.mrf.mxu1 }
 0x2bd   : > { %v407_v40 = vpop.f32.mrf.mxu1 }
 0x2bf   : > { %v1041_v41 = vpop.f32.mrf.mxu1 }
 0x2c1   : > { %v470_v42 = vpop.f32.mrf.mxu1 }
 0x2c2   : > { %v476_v43 = vmul.f32 0.35355338, %v470_v42 }
 0x2c3   : > { %v1046_v44 = vpop.f32.mrf.mxu1 }
 0x2c4   : > { %v1305_v45 = vsel %vm288_vm3, %v476_v43, -1e+30 }
 0x2c5   : > { %v473_v46 = vpop.f32.mrf.mxu1  ;;  %v479_v47 = vsel %vm289_vm1, %v1305_v45, -inf }
 0x2c6   : > { %480 = vmax.xlane.f32.xlu1 %v479_v47 }
 0x2c7   : > { %v1047_v48 = vpop.f32.mrf.mxu1 }
 0x2c9   : > { %v613_v49 = vpop.f32.mrf.mxu1 }
 0x2ca   : > { %v619_v50 = vmul.f32 0.35355338, %v613_v49 }
 0x2cb   : > { %v1058_v51 = vpop.f32.mrf.mxu1 }
 0x2cc   : > { %v1312_v52 = vsel %vm288_vm3, %v619_v50, -1e+30 }
 0x2cd   : > { %v616_v53 = vpop.f32.mrf.mxu1  ;;  %v622_v54 = vsel %vm289_vm1, %v1312_v52, -inf }
 0x2ce   : > { %623 = vmax.xlane.f32.xlu0 %v622_v54 }
 0x2cf   : > { %v1059_v55 = vpop.f32.mrf.mxu1 }
 0x2d1   : > { %v753_v56 = vpop.f32.mrf.mxu1 }
 0x2d2   : > { %v759_v58 = vmul.f32 0.35355338, %v753_v56 }
 0x2d3   : > { %v1070_v59 = vpop.f32.mrf.mxu1 }
 0x2d4   : > { %v1320_v60 = vsel %vm288_vm3, %v759_v58, -1e+30 }
 0x2d5   : > { %v756_v61 = vpop.f32.mrf.mxu1  ;;  %v762_v62 = vsel %vm289_vm1, %v1320_v60, -inf }
 0x2d6   : > { %763 = vmax.xlane.f32.xlu1 %v762_v62 }
 0x2d7   : > { %v1071_v63 = vpop.f32.mrf.mxu1 }
 0x34f   : > { %v481_v3 = vpop.xlane.xlu1 %480 }
 0x350   : > { %v1331_v5 = vmax.f32 %v1328_v4, %v481_v3 }
 0x352   : > { %v483_v7 = vsub.f32 %v1328_v4, %v1331_v5  ;;  %568 = vst.msk [vmem:[#allocation2] sm:$0xff] %vm500_vm6, %v1331_v5  ;;  %488 = vperm.xlu1 %1116, %v1331_v5  }
 0x354   : > { %v484_v47 = vmul.f32 1.442695, %v483_v7 }
 0x356   : > { %506 = vrot.lane.b32.xlu1 %v1006_v6, %s1176_s23 }
 0x357   : > { %v624_v8 = vpop.xlane.xlu0 %623  ;;  %1118 = vset.pattern.permute.xlu1 %v1181_v9 }
 0x359   : > { %v621_v10 = vld [vmem:[#allocation2] sm:$0xff] }
 0x35a   : > { %v625_v11 = vmax.f32 %v621_v10, %v624_v8 }
 0x35c   : > { %v626_v12 = vsub.f32 %v621_v10, %v625_v11  ;;  %708 = vst.msk [vmem:[#allocation2] sm:$0xff] %vm643_vm8, %v625_v11  ;;  %631 = vperm.xlu0 %1117, %v625_v11  }
 0x35e   : > { %v627_v39 = vmul.f32 1.442695, %v626_v12 }
 0x35f   : > { %v764_v14 = vpop.xlane.xlu1 %763 }
 0x360   : > { %1119 = vset.pattern.permute.xlu0 %v1175_v15 }
 0x361   : > { %413 = vperm.xlu0 %1119, %v1344_v13  }
 0x363   : > { %v1348_v16 = vld [vmem:[#allocation2] sm:$0xff] }
 0x364   : > { %v1351_v17 = vmax.f32 %v1348_v16, %v764_v14 }
 0x365   : > { %1121 = vset.pattern.permute.xlu0 %v1180_v1 }
 0x366   : > { %v766_v18 = vsub.f32 %v1348_v16, %v1351_v17  ;;  %848 = vst.msk [vmem:[#allocation2] sm:$0xff] %vm783_vm9, %v1351_v17  ;;  %771 = vperm.xlu1 %1118, %v1351_v17  }
 0x36a   : > { %646 = vrot.lane.b32.xlu1 %v1006_v6, %s1177_s24 }
 0x36b   : > { %1120 = vset.pattern.permute.xlu1 %v1179_v57 }
 0x36e   : > { %786 = vrot.lane.b32.xlu1 %v1006_v6, %s1178_s25 }
 0x392   : > { %357 = vadd.xlane.f32.xlu1 %v356_v19 }
 0x3cd   : > { %v489_v20 = vpop.permute.xlu1 %488 }
 0x3ce   : > { %v491_v21 = vsub.f32 %v1305_v45, %v489_v20 }
 0x3d0   : > { %v492_v22 = vmul.f32 1.442695, %v491_v21 }
 0x3d1   : > { %v507_v23 = vpop.permute.xlu1 %506 }
 0x3d2   : > { %1134 = vpow2.f32 %v492_v22  ;;  %v512_v24 = vsel %vm366_vm5, %v507_v23, 0 }
 0x3d3   : > { %1049 = vmatpush3.bf16.msra.mxu0 %v512_v24 }
 0x3d4   : > { %1060 = vmatprep.subr.bf16.mxu0 %v1172_v0 }
 0x3d7   : > { %v632_v25 = vpop.permute.xlu0 %631 }
 0x3d8   : > { %v634_v26 = vsub.f32 %v1312_v52, %v632_v25 }
 0x3da   : > { %v635_v27 = vmul.f32 1.442695, %v634_v26 }
 0x3dc   : > { %1136 = vpow2.f32 %v635_v27  ;;  %v414_v30 = vpop.permute.xlu0 %413 }
 0x3dd   : > { %v416_v29 = vmul.f32 %v414_v30, %v410_v28 }
 0x3df   : > { %v1135_v31 = vpop.eup %1134  ;;  %v417_v32 = vadd.f32 %v416_v29, %v1300_v38 }
 0x3e0   : > { %v496_v33 = vsel %vm289_vm1, %v1135_v31, 0.0  ;;  %v502_v34 = vpack.c.bf16 %v1135_v31, %v1135_v31 }
 0x3e1   : > { %418 = vst.msk [vmem:[#allocation4] sm:$0xff] %vm289_vm1, %v417_v32  ;;  %v772_v35 = vpop.permute.xlu1 %771  ;;  %497 = vadd.xlane.f32.xlu0 %v496_v33 }
 0x3e2   : > { %v774_v36 = vsub.f32 %v1320_v60, %v772_v35  ;;  %1051 = vmatmul.mubr.msk.bf16.vlgmr.msra.gmra.mxu0 %vm289_vm1, %v502_v34  ;;  %v767_v60 = vmul.f32 1.442695, %v766_v18 }
 0x3e3   : > { %1062 = vmatprep.mubr.msk.bf16.mxu0 %vm1173_vm0, %v1172_v0 }
 0x3e4   : > { %v775_v37 = vmul.f32 1.442695, %v774_v36 }
 0x3e5   : > { %v647_v40 = vpop.permute.xlu1 %646 }
 0x3e6   : > { %1138 = vpow2.f32 %v775_v37  ;;  %v652_v38 = vsel %vm366_vm5, %v647_v40, 0 }
 0x3e7   : > { %1061 = vmatpush3.bf16.msra.mxu0 %v652_v38  ;;  %1140 = vpow2.f32 %v627_v39 }
 0x3e8   : > { %1072 = vmatprep.subr.bf16.mxu0 %v1172_v0  ;;  %1142 = vpow2.f32 %v484_v47  ;;  %v554_v24 = vld [vmem:[#allocation4] sm:$0xff] }
 0x3e9   : > { %v1137_v41 = vpop.eup %1136  ;;  %v787_v42 = vpop.permute.xlu1 %786  ;;  %1144 = vpow2.f32 %v767_v60 }
 0x3ea   : > { %v639_v43 = vsel %vm289_vm1, %v1137_v41, 0.0  ;;  %v645_v44 = vpack.c.bf16 %v1137_v41, %v1137_v41  ;;  %v792_v45 = vsel %vm366_vm5, %v787_v42, 0 }
 0x3eb   : > { %640 = vadd.xlane.f32.xlu1 %v639_v43 }
 0x3ec   : > { %1063 = vmatmul.mubr.msk.bf16.vlgmr.msra.gmra.mxu0 %vm289_vm1, %v645_v44 }
 0x3ed   : > { %1073 = vmatpush3.bf16.msra.mxu0 %v792_v45  ;;  %1074 = vmatprep.mubr.msk.bf16.mxu0 %vm1173_vm0, %v1172_v0  ;;  %v354_v0 = vld [vmem:[#allocation3] sm:$0xff] }
 0x3ee   : > { %v355_v52 = vmul.f32 %v1344_v13, %v354_v0 }
 0x3f3   : > { %v1139_v46 = vpop.eup %1138 }
 0x3f4   : > { %v779_v48 = vsel %vm289_vm1, %v1139_v46, 0.0  ;;  %v785_v49 = vpack.c.bf16 %v1139_v46, %v1139_v46  ;;  %v1141_v50 = vpop.eup %1140 }
 0x3f5   : > { %780 = vadd.xlane.f32.xlu1 %v779_v48  ;;  %v1143_v51 = vpop.eup %1142 }
 0x3f6   : > { %1075 = vmatmul.mubr.msk.bf16.vlgmr.msra.gmra.mxu0 %vm289_vm1, %v785_v49  ;;  %v1145_v3 = vpop.eup %1144 }
 0x3f7   : > { %697 = vperm.xlu0 %1121, %v1141_v50  }
 0x3fb   : > { %1127 = vset.pattern.permute.xlu0 %v1181_v9 }
 0x406   : > { %557 = vperm.xlu1 %1120, %v1143_v51  }
 0x40a   : > { %1122 = vset.pattern.permute.xlu1 %v1181_v9 }
 0x41b   : > { %v358_v53 = vpop.xlane.xlu1 %357 }
 0x41c   : > { %v359_v54 = vadd.f32 %v358_v53, %v355_v52 }
 0x41e   : > { %361 = vst.msk [vmem:[#allocation3] sm:$0xff] %vm360_vm4, %v359_v54 }
 0x425   : > { %v494_v55 = vld [vmem:[#allocation3] sm:$0xff] }
 0x426   : > { %v495_v56 = vmul.f32 %v1143_v51, %v494_v55 }
 0x46a   : > { %v498_v58 = vpop.xlane.xlu0 %497 }
 0x46b   : > { %v499_v59 = vadd.f32 %v498_v58, %v495_v56 }
 0x46d   : > { %501 = vst.msk [vmem:[#allocation3] sm:$0xff] %vm500_vm6, %v499_v59 }
 0x472   : > { %v698_v30 = vpop.permute.xlu0 %697 }
 0x474   : > { %v637_v61 = vld [vmem:[#allocation3] sm:$0xff]  ;;  %v641_v63 = vpop.xlane.xlu1 %640 }
 0x475   : > { %v638_v62 = vmul.f32 %v1141_v50, %v637_v61 }
 0x477   : > { %v642_v2 = vadd.f32 %v641_v63, %v638_v62 }
 0x479   : > { %644 = vst.msk [vmem:[#allocation3] sm:$0xff] %vm643_vm8, %v642_v2 }
 0x47e   : > { %v781_v6 = vpop.xlane.xlu1 %780 }
 0x480   : > { %v777_v4 = vld [vmem:[#allocation3] sm:$0xff] }
 0x481   : > { %v778_v5 = vmul.f32 %v1145_v3, %v777_v4 }
 0x483   : > { %v782_v7 = vadd.f32 %v781_v6, %v778_v5 }
 0x485   : > { %784 = vst.msk [vmem:[#allocation3] sm:$0xff] %vm783_vm9, %v782_v7 }
 0x48c   : > { %v852_v8 = vld [vmem:[#allocation3] sm:$0xff] }
 0x48d   : > { %1146 = vrcp.f32 %v852_v8 }
 0x49a   : > { %v1147_v17 = vpop.eup %1146 }
 0x4a2   : > { %v548_v10 = vpop.f32.mrf.mxu0 }
 0x4a3   : > { %562 = vrot.lane.b32.xlu1 %v548_v10, %s1182_s29 }
 0x4a4   : > { %v1052_v11 = vpop.f32.mrf.mxu0 }
 0x4a6   : > { %v551_v12 = vpop.f32.mrf.mxu0 }
 0x4a7   : > { %837 = vperm.xlu1 %1122, %v1145_v3  }
 0x4a8   : > { %v1053_v13 = vpop.f32.mrf.mxu0 }
 0x4ab   : > { %1123 = vset.pattern.permute.xlu1 %v1175_v15  ;;  %v558_v15 = vpop.permute.xlu1 %557 }
 0x4ac   : > { %v688_v14 = vpop.f32.mrf.mxu0  ;;  %v560_v25 = vmul.f32 %v558_v15, %v554_v24 }
 0x4ad   : > { %702 = vrot.lane.b32.xlu1 %v688_v14, %s1183_s30 }
 0x4ae   : > { %v1064_v16 = vpop.f32.mrf.mxu0 }
 0x4b0   : > { %v691_v18 = vpop.f32.mrf.mxu0 }
 0x4b1   : > { %857 = vperm.xlu1 %1123, %v1147_v17  }
 0x4b2   : > { %v1065_v19 = vpop.f32.mrf.mxu0 }
 0x4b5   : > { %1124 = vset.pattern.permute.xlu1 %v1179_v57 }
 0x4b6   : > { %862 = vperm.xlu1 %1124, %v1147_v17   ;;  %v828_v20 = vpop.f32.mrf.mxu0 }
 0x4b8   : > { %v1076_v21 = vpop.f32.mrf.mxu0 }
 0x4ba   : > { %842 = vrot.lane.b32.xlu1 %v828_v20, %s1184_s4  ;;  %v831_v22 = vpop.f32.mrf.mxu0 }
 0x4bb   : > { %1125 = vset.pattern.permute.xlu1 %v1180_v1 }
 0x4bc   : > { %v1077_v23 = vpop.f32.mrf.mxu0 }
 0x4be   : > { %867 = vperm.xlu1 %1125, %v1147_v17  }
 0x4c2   : > { %1126 = vset.pattern.permute.xlu1 %v1181_v9 }
 0x4c3   : > { %872 = vperm.xlu1 %1126, %v1147_v17  }
 0x515   : > { %v563_v26 = vpop.permute.xlu1 %562 }
 0x516   : > { %v565_v27 = vadd.f32 %v563_v26, %v560_v25 }
 0x518   : > { %567 = vst.msk [vmem:[#allocation4] sm:$0xff] %vm566_vm10, %v565_v27 }
 0x51f   : > { %v694_v28 = vld [vmem:[#allocation4] sm:$0xff] }
 0x520   : > { %v700_v29 = vmul.f32 %v698_v30, %v694_v28 }
 0x522   : > { %v838_v57 = vpop.permute.xlu1 %837 }
 0x526   : > { %v703_v31 = vpop.permute.xlu1 %702 }
 0x527   : > { %v705_v32 = vadd.f32 %v703_v31, %v700_v29 }
 0x529   : > { %707 = vst.msk [vmem:[#allocation4] sm:$0xff] %vm706_vm11, %v705_v32 }
 0x52c   : > { %v858_v1 = vpop.permute.xlu1 %857 }
 0x530   : > { %v834_v34 = vld [vmem:[#allocation4] sm:$0xff] }
 0x531   : > { %v863_v33 = vpop.permute.xlu1 %862  ;;  %v840_v9 = vmul.f32 %v838_v57, %v834_v34 }
 0x535   : > { %v843_v35 = vpop.permute.xlu1 %842 }
 0x536   : > { %v845_v36 = vadd.f32 %v843_v35, %v840_v9 }
 0x538   : > { %847 = vst.msk [vmem:[#allocation4] sm:$0xff] %vm846_vm12, %v845_v36 }
 0x539   : > { %v868_v37 = vpop.permute.xlu1 %867 }
 0x53e   : > { %v873_v40 = vpop.permute.xlu1 %872 }
 0x53f   : > { %v854_v39 = vld [vmem:[#allocation4] sm:$0xff] }
 0x540   : > { %v860_v38 = vmul.f32 %v858_v1, %v854_v39  ;;  %v865_v41 = vmul.f32 %v863_v33, %v854_v39  ;;  %v870_v42 = vmul.f32 %v868_v37, %v854_v39  ;;  %v875_v44 = vmul.f32 %v873_v40, %v854_v39 }
 0x542   : > { %v877_v43 = vsel %vm289_vm1, %v860_v38, %v865_v41 }
 0x543   : > { %v879_v45 = vsel %vm878_vm13, %v877_v43, %v870_v42 }
 0x544   : > { %v881_v46 = vsel %vm880_vm14, %v879_v45, %v875_v44 }
 0x545   : > { %v882_v47 = vpack.c.bf16 %v881_v46, %v881_v46 }
 0x547   : > { %884 = vst.msk [vmem:[%s259_s7] sm:$0xf] %vm883_vm15, %v882_v47 }
 0x548 PF: > { %s13_s14 = sadd.s32 1, %s1170_s14   ;;  %s1419_s12 = smov %s1166_s13 }
 0x549   : > { %p10_p5 = scmp.ge.s32.totalorder %s13_s14, 4   ;;  %s1420_s13 = smov %s1422_s15 }
 0x54b   :  { %12 = sbr.rel (!%p10_p5) target bundleno = 2 (0x2), region = 80 }

// kernel: autoregressive_lm_forward.21
= control target key start
LH: loop header
LB: loop body
LE: loop exit
PB: predicated region body
PF: predicated region fallthrough
CT: control target
= control target key end

     0   :  { %vm21_vm0 = vcmask 261120   ;;  %s252_s0 = inlined_call_operand.vmem [shape: f32[16,32], index: 0, kind: input, shape index: {}]   ;;  %s253_s1 = inlined_call_operand.vmem [shape: f32[1,32], index: 1, kind: input, shape index: {}]   ;;  %s254_s2 = inlined_call_operand.vmem [shape: f32[1,32], index: 2, kind: input, shape index: {}]   ;;  %s255_s3 = inlined_call_operand.vmem [shape: bf16[32,64], index: 3, kind: input, shape index: {}]   ;;  %s256_s4 = inlined_call_operand.hbm [shape: f32[16,64], index: 4, kind: output, shape index: {}]  }
   0x1   :  { %v19_v0 = vld [vmem:[%s252_s0] sm:$0xff]  ;;  %v20_v1 = vld [vmem:[%s252_s0 + $0x8] sm:$0xff] }
   0x2   :  { %v22_v2 = vsel %vm21_vm0, %v19_v0, 0.0 }
   0x3   :  { %23 = vadd.xlane.f32.xlu0 %v22_v2 }
   0x4   :  { %9 = vsyncpa [#allocation3], 0  ;;  %v25_v3 = vsel %vm21_vm0, %v20_v1, 0.0  ;;  %v168_v14 = vld [vmem:[%s255_s3 + $0x8] sm:$0xff]   ;;  %v196_v15 = vmov 0.0   ;;  %vm197_vm1 = vmmov 0  }
   0x5   :  { %155 = vmatprep.subr.bf16.mxu0 %v196_v15  ;;  %159 = vmatprep.mubr.msk.bf16.mxu0 %vm197_vm1, %v196_v15  ;;  %v169_v16 = vld [vmem:[%s255_s3] sm:$0xff]   ;;  %vm128_vm2 = vcmask 523264   ;;  %s198_s25 = smov [#allocation2]  }
   0x6   :  { %156 = vmatpush3.bf16.msra.mxu0 %v168_v14  ;;  %v147_v25 = vld [vmem:[%s253_s1] ss:$0 sm:$0xff]  ;;  %s136_s26 = sshll.u32 %s198_s25, 4  ;;  %s137_s26 = int_to_ptr.vmem [resolvable:$true] %s136_s26 }
   0x7   :  { %26 = vadd.xlane.f32.xlu0 %v25_v3  ;;  %157 = vmatprep.subr.bf16.mxu0 %v196_v15  ;;  %v148_v29 = vld [vmem:[%s254_s2] ss:$0 sm:$0xff]  ;;  %s174_s1 = scalar_lea.vmem %s137_s26, 256  ;;  %p179_p1 = scmp.lt.s32.totalorder %s137_s26, %s137_s26 }
   0x8   :  { %p175_p0 = scmp.ne.s32.totalorder %s137_s26, %s174_s1  ;;  %p180_p2 = scmp.lt.s32.totalorder %s174_s1, %s174_s1 }
   0xa   :  { %158 = vmatpush3.bf16.msra.mxu0 %v169_v16  ;;  %p181_p3 = por %p180_p2, %p179_p1 }
   0xc   :  { %p182_p4 = pnand %p181_p3, %p175_p0 }
  0x8c   :  { %v24_v4 = vpop.xlane.xlu0 %23 }
  0x8d   :  { %v29_v5 = vmul.f32 0.03125, %v24_v4 }
  0x8f   :  { %v31_v6 = vsub.f32 %v19_v0, %v29_v5 }
  0x90   :  { %v27_v7 = vpop.xlane.xlu0 %26 }
  0x91   :  { %v30_v8 = vmul.f32 0.03125, %v27_v7  ;;  %v33_v9 = vmul.f32 %v31_v6, %v31_v6 }
  0x93   :  { %v32_v10 = vsub.f32 %v20_v1, %v30_v8  ;;  %v35_v11 = vsel %vm21_vm0, %v33_v9, 0.0 }
  0x94   :  { %36 = vadd.xlane.f32.xlu1 %v35_v11 }
  0x95   :  { %v34_v12 = vmul.f32 %v32_v10, %v32_v10 }
  0x97   :  { %v38_v13 = vsel %vm21_vm0, %v34_v12, 0.0 }
  0x98   :  { %39 = vadd.xlane.f32.xlu1 %v38_v13 }
 0x11d   :  { %v37_v17 = vpop.xlane.xlu1 %36 }
 0x11e   :  { %v41_v18 = vmul.f32 0.03125, %v37_v17 }
 0x120   :  { %v43_v19 = vadd.f32 1e-05, %v41_v18 }
 0x121   :  { %v40_v20 = vpop.xlane.xlu1 %39 }
 0x122   :  { %170 = vrsqrt.f32 %v43_v19  ;;  %v42_v21 = vmul.f32 0.03125, %v40_v20 }
 0x124   :  { %v44_v22 = vadd.f32 1e-05, %v42_v21 }
 0x126   :  { %172 = vrsqrt.f32 %v44_v22 }
 0x12f   :  { %v171_v23 = vpop.eup %170 }
 0x130   :  { %v47_v24 = vmul.f32 %v171_v23, %v31_v6 }
 0x132   :  { %v56_v28 = vmul.f32 %v147_v25, %v47_v24 }
 0x133   :  { %v173_v26 = vpop.eup %172 }
 0x134   :  { %v48_v27 = vmul.f32 %v173_v26, %v32_v10  ;;  %v65_v31 = vadd.f32 %v148_v29, %v56_v28 }
 0x136   :  { %v57_v30 = vmul.f32 %v147_v25, %v48_v27 }
 0x138   :  { %v66_v32 = vadd.f32 %v148_v29, %v57_v30 }
 0x13a   :  { %v67_v33 = vpack.c.bf16 %v66_v32, %v65_v31 }
 0x13c   :  { %160 = vmatmul.mubr.msk.bf16.vlgmr.msra.gmra.mxu0 %vm21_vm0, %v67_v33 }
 0x1fc   :  { %v121_v34 = vpop.f32.mrf.mxu0 }
 0x1fd   :  { %129 = vst.msk [vmem:[#allocation2] sm:$0xff] %vm128_vm2, %v121_v34 }
 0x1fe   :  { %v161_v35 = vpop.f32.mrf.mxu0 }
 0x200   :  { %v124_v36 = vpop.f32.mrf.mxu0 }
 0x201   :  { %130 = vst.msk [vmem:[#allocation2 + $0x8] sm:$0xff] %vm128_vm2, %v124_v36 }
 0x202   :  { %v162_v37 = vpop.f32.mrf.mxu0 }
 0x203   :  { %185 = shalt.err (!%p182_p4)
}
 0x204   :  { %s199_s2 = smov 128   ;;  %s200_s27 = smov 8  }
 0x205   :  { %142 = dma.vmem_to_hbm [thread:$0]  %s137_s26, 256, %s256_s4, [#allocation3], %s199_s2, %s199_s2, %s200_s27  }
 0x206   :  { %194 = dma.done.wait [#allocation3], 256  }
 0x207   :  { %195 = vsyncadd [#allocation3], 4294967040 }
 0x208   :  { %146 = vsyncpa [#allocation3], 1 }

// kernel: autoregressive_lm_forward.15
= control target key start
LH: loop header
LB: loop body
LE: loop exit
PB: predicated region body
PF: predicated region fallthrough
CT: control target
= control target key end

     0   :  { %vm22_vm0 = vcmask 261120   ;;  %v219_v0 = vmov 0.0   ;;  %vm220_vm1 = vmmov 0   ;;  %s294_s1 = inlined_call_operand.vmem [shape: bf16[128,32], index: 1, kind: input, shape index: {}]   ;;  %s295_s0 = inlined_call_operand.vmem [shape: bf16[16,128], index: 0, kind: input, shape index: {}]   ;;  %s296_s2 = inlined_call_operand.vmem [shape: f32[1,32], index: 2, kind: input, shape index: {}]   ;;  %s297_s3 = inlined_call_operand.vmem [shape: f32[16,32], index: 3, kind: input, shape index: {}]   ;;  %s298_s4 = inlined_call_operand.vmem [shape: f32[16,32], index: 4, kind: output, shape index: {}]  }
   0x1   :  { %188 = vmatprep.subr.bf16.mxu0 %v219_v0  ;;  %v210_v1 = vld [vmem:[%s294_s1 + $0x38] sm:$0xff]   ;;  %204 = vmatprep.mubr.msk.bf16.mxu0 %vm220_vm1, %v219_v0  ;;  %23 = vst.msk [vmem:[#allocation2] sm:$0xff] %vm22_vm0, %v219_v0  ;;  %24 = vst.msk [vmem:[#allocation2 + $0x8] sm:$0xff] %vm22_vm0, %v219_v0  ;;  %v211_v2 = vld [vmem:[%s294_s1 + $0x30] sm:$0xff]  }
   0x2   :  { %189 = vmatpush3.bf16.msra.mxu0 %v210_v1  ;;  %v212_v3 = vld [vmem:[%s294_s1 + $0x28] sm:$0xff]   ;;  %v213_v4 = vld [vmem:[%s294_s1 + $0x20] sm:$0xff]   ;;  %v214_v5 = vld [vmem:[%s294_s1 + $0x18] sm:$0xff]  }
   0x3   :  { %190 = vmatprep.subr.bf16.mxu0 %v219_v0  ;;  %v215_v6 = vld [vmem:[%s294_s1 + $0x10] sm:$0xff]   ;;  %v216_v7 = vld [vmem:[%s294_s1 + $0x8] sm:$0xff]   ;;  %v217_v8 = vld [vmem:[%s294_s1] sm:$0xff]  }
   0x4   :  { %v218_v9 = vld [vmem:[%s295_s0] sm:$0xff]   ;;  %v160_v23 = vld [vmem:[%s297_s3 + $0x8] sm:$0xff] }
   0x5   :  { %v178_v18 = vld [vmem:[%s296_s2] ss:$0 sm:$0xff] }
   0x6   :  { %191 = vmatpush3.bf16.msra.mxu0 %v211_v2  ;;  %v159_v20 = vld [vmem:[%s297_s3] sm:$0xff] }
   0x7   :  { %192 = vmatprep.subr.bf16.mxu0 %v219_v0 }
   0x8   :  { %v25_v10 = vld [vmem:[#allocation2] sm:$0xff]  ;;  %v26_v14 = vld [vmem:[#allocation2 + $0x8] sm:$0xff] }
   0xa   :  { %193 = vmatpush3.bf16.msra.mxu0 %v212_v3 }
   0xb   :  { %194 = vmatprep.subr.bf16.mxu0 %v219_v0 }
   0xe   :  { %195 = vmatpush3.bf16.msra.mxu0 %v213_v4 }
   0xf   :  { %196 = vmatprep.subr.bf16.mxu0 %v219_v0 }
  0x12   :  { %197 = vmatpush3.bf16.msra.mxu0 %v214_v5 }
  0x13   :  { %198 = vmatprep.subr.bf16.mxu0 %v219_v0 }
  0x16   :  { %199 = vmatpush3.bf16.msra.mxu0 %v215_v6 }
  0x17   :  { %200 = vmatprep.subr.bf16.mxu0 %v219_v0 }
  0x1a   :  { %201 = vmatpush3.bf16.msra.mxu0 %v216_v7 }
  0x1b   :  { %202 = vmatprep.subr.bf16.mxu0 %v219_v0 }
  0x1e   :  { %203 = vmatpush3.bf16.msra.mxu0 %v217_v8 }
  0x21   :  { %205 = vmatmul.mubr.bf16.vlgmr.msra.gmra.mxu0 %v218_v9 }
  0xe1   :  { %v133_v11 = vpop.f32.mrf.mxu0 }
  0xe2   :  { %v140_v12 = vadd.f32 %v133_v11, %v25_v10 }
  0xe3   :  { %v206_v13 = vpop.f32.mrf.mxu0 }
  0xe4   :  { %143 = vst.msk [vmem:[#allocation2] sm:$0xff] %vm22_vm0, %v140_v12 }
  0xe5   :  { %v136_v15 = vpop.f32.mrf.mxu0 }
  0xe6   :  { %v141_v16 = vadd.f32 %v136_v15, %v26_v14 }
  0xe7   :  { %v207_v17 = vpop.f32.mrf.mxu0 }
  0xe8   :  { %144 = vst.msk [vmem:[#allocation2 + $0x8] sm:$0xff] %vm22_vm0, %v141_v16 }
  0xeb   :  { %v148_v19 = vld [vmem:[#allocation2] sm:$0xff] }
  0xec   :  { %v157_v21 = vadd.f32 %v178_v18, %v148_v19 }
  0xee   :  { %v161_v22 = vadd.f32 %v159_v20, %v157_v21 }
  0xef   :  { %v149_v24 = vld [vmem:[#allocation2 + $0x8] sm:$0xff] }
  0xf0   :  { %163 = vst.msk [vmem:[%s298_s4] sm:$0xff] %vm22_vm0, %v161_v22  ;;  %v158_v25 = vadd.f32 %v178_v18, %v149_v24 }
  0xf2   :  { %v162_v26 = vadd.f32 %v160_v23, %v158_v25 }
  0xf4   :  { %164 = vst.msk [vmem:[%s298_s4 + $0x8] sm:$0xff] %vm22_vm0, %v162_v26 }

</bundles_post_ra>
